<compile_context>
chip_gen: v7x
topology: tpu7x:2x2x1
jax: 0.10.0
libtpu: 0.0.40
codegen_flags: <defaults>
</compile_context>

<pallas_src>
import functools

import numpy as np
import jax
import jax.numpy as jnp
from jax import lax
from jax.experimental import pallas as pl
from jax.experimental.pallas import tpu as pltpu


# ---------------------------------------------------------------------------
# Host-side constant construction
# ---------------------------------------------------------------------------
def _bilinear_matrix(in_size: int, out_size: int) -> np.ndarray:
    """(out_size, in_size) interpolation matrix matching
    torch.nn.Upsample(mode='bilinear', align_corners=False) along one axis."""
    scale = in_size / out_size
    U = np.zeros((out_size, in_size), dtype=np.float32)
    for o in range(out_size):
        src = (o + 0.5) * scale - 0.5
        i0 = int(np.floor(src))
        frac = src - i0
        i0c = min(max(i0, 0), in_size - 1)
        i1c = min(max(i0 + 1, 0), in_size - 1)
        U[o, i0c] += 1.0 - frac
        U[o, i1c] += frac
    return U


def _padded_upsample_matrices(H: int, W: int, pad: int):
    """Fold the conv's zero spatial padding into the upsample matrices (zero rows)."""
    Hp, Wp = 2 * H + 2 * pad, 2 * W + 2 * pad
    Uh_pad = np.zeros((Hp, H), np.float32)
    Uh_pad[pad:pad + 2 * H] = _bilinear_matrix(H, 2 * H)
    Uw_pad = np.zeros((Wp, W), np.float32)
    Uw_pad[pad:pad + 2 * W] = _bilinear_matrix(W, 2 * W)
    return Uh_pad, Uw_pad


def _fold_conv_into_h_matrix(w, uh_pad: np.ndarray, K: int, Ho: int):
    """A[(kw, co, ho), (ci, h)] = sum_kh w[co, ci, kh, kw] * uh_pad[ho + kh, h].

    Folds the H-axis upsample (+ zero pad), the kh conv taps, the conv weights and the
    input-channel contraction into a single bf16 matmul operand."""
    Cout, Cin = w.shape[0], w.shape[1]
    H = uh_pad.shape[1]
    uhk = np.stack([uh_pad[kh:kh + Ho] for kh in range(K)], axis=0)        # (K, Ho, H)
    a = jnp.einsum('ocyx,yph->xopch', w.astype(jnp.float32), jnp.asarray(uhk))
    return a.reshape(K * Cout * Ho, Cin * H).astype(jnp.bfloat16)


# ---------------------------------------------------------------------------
# Kernel 1: fused upsample + pad + conv + per-image BN partial sums (pure MXU matmuls)
# ---------------------------------------------------------------------------
def _upsample_conv_kernel(x_ref, a_ref, uwk_ref, y_ref, s1_ref, s2_ref,
                          *, k, cout, ho, wo):
    # Stage 1: H upsample (+ pad) + kh taps + conv weights + channel contraction,
    # all folded into one precomputed bf16 matrix:
    #   p[(kw, co, ho), w] = sum_{ci,h,kh} W[co,ci,kh,kw] * Uh_pad[ho+kh,h] * x[ci,h,w]
    p = jnp.dot(a_ref[...], x_ref[0], preferred_element_type=jnp.float32)  # (K*Cout*Ho, W)
    p = p.astype(jnp.bfloat16)

    # Stage 2: W upsample (+ pad) with the kw taps folded into K precomputed matrices.
    # K sublane-aligned row blocks of p, K small matmuls accumulated -- no lane slicing.
    n_rows = cout * ho
    acc = jnp.dot(p[0:n_rows, :], uwk_ref[0], preferred_element_type=jnp.float32)
    for kw in range(1, k):
        acc = acc + jnp.dot(p[kw * n_rows:(kw + 1) * n_rows, :], uwk_ref[kw],
                            preferred_element_type=jnp.float32)            # (Cout*Ho, Wo)
    # NOTE: conv bias intentionally omitted -- exactly cancelled by train-mode BatchNorm
    # mean subtraction, so final outputs are unchanged.

    acc3 = acc.reshape(cout, ho, wo)                                        # free reshape

    # Per-image BN partial statistics, stored lane-major (last dim = Cout).
    ch_sum = jnp.sum(jnp.sum(acc3, axis=1), axis=1)                         # (Cout,)
    ch_sq = jnp.sum(jnp.sum(acc3 * acc3, axis=1), axis=1)                   # (Cout,)
    s1_ref[0] = ch_sum.reshape(1, cout)
    s2_ref[0] = ch_sq.reshape(1, cout)

    # f32 intermediate: stats and the data kernel 2 normalizes are exactly consistent;
    # HBM traffic is negligible at these shapes (and avoids the bf16 pack cost on v5e).
    y_ref[0] = acc3


# ---------------------------------------------------------------------------
# Kernel 2: BN normalize (precombined per-channel scale/shift) + ReLU
# ---------------------------------------------------------------------------
def _bn_relu_kernel(y_ref, sc_ref, sh_ref, o_ref):
    y = y_ref[0]                                                            # (Cout, Ho, Wo)
    o_ref[0] = jnp.maximum(y * sc_ref[...] + sh_ref[...], 0.0)


# ---------------------------------------------------------------------------
# Wrapper
# ---------------------------------------------------------------------------
def upsample_bn_forward(x_nchw, params, *, kernel_size=3, stride=1, padding=1, eps=1e-5):
    # TODO(synk): only stride=1 is implemented (the tap folding assumes it); the example
    # instantiation uses stride=1.
    assert stride == 1
    w, b, gamma, beta = params        # b unused: cancelled by train-mode BN (see kernel 1)
    del b
    N, Cin, H, W = x_nchw.shape
    Cout, K = w.shape[0], kernel_size
    Hp, Wp = 2 * H + 2 * padding, 2 * W + 2 * padding
    Ho, Wo = Hp - K + 1, Wp - K + 1

    # Host-precomputed folded operands (bf16 MXU operands).
    Uh_pad, Uw_pad = _padded_upsample_matrices(H, W, padding)
    a_mat = _fold_conv_into_h_matrix(w, Uh_pad, K, Ho)                      # (K*Cout*Ho, Cin*H)
    uwk = jnp.asarray(
        np.stack([Uw_pad[kw:kw + Wo].T for kw in range(K)], axis=0),        # (K, W, Wo)
        dtype=jnp.bfloat16)
    x2 = x_nchw.reshape(N, Cin * H, W).astype(jnp.bfloat16)

    cparams = pltpu.CompilerParams(dimension_semantics=("parallel",))

    k1_flops = N * (2 * (K * Cout * Ho) * (Cin * H) * W + K * 2 * (Cout * Ho) * W * Wo)
    k1_bytes = (N * Cin * H * W * 2 + (K * Cout * Ho) * (Cin * H) * 2 + K * W * Wo * 2
                + N * Cout * Ho * Wo * 4 + 2 * N * Cout * 4)
    kern1 = functools.partial(_upsample_conv_kernel, k=K, cout=Cout, ho=Ho, wo=Wo)
    y, ssum, ssq = pl.pallas_call(
        kern1,
        grid=(N,),
        in_specs=[
            pl.BlockSpec((1, Cin * H, W), lambda n: (n, 0, 0)),
            pl.BlockSpec((K * Cout * Ho, Cin * H), lambda n: (0, 0)),       # fetched once
            pl.BlockSpec((K, W, Wo), lambda n: (0, 0, 0)),                  # fetched once
        ],
        out_specs=(
            pl.BlockSpec((1, Cout, Ho, Wo), lambda n: (n, 0, 0, 0)),
            pl.BlockSpec((1, 1, Cout), lambda n: (n, 0, 0)),
            pl.BlockSpec((1, 1, Cout), lambda n: (n, 0, 0)),
        ),
        out_shape=(
            jax.ShapeDtypeStruct((N, Cout, Ho, Wo), jnp.float32),   # conv result (pre-BN)
            jax.ShapeDtypeStruct((N, 1, Cout), jnp.float32),        # per-image sum (lane-major)
            jax.ShapeDtypeStruct((N, 1, Cout), jnp.float32),        # per-image sum of squares
        ),
        compiler_params=cparams,
        cost_estimate=pl.CostEstimate(flops=k1_flops, transcendentals=0,
                                      bytes_accessed=k1_bytes),
    )(x2, a_mat, uwk)

    # Tiny per-channel stats combine (a few floats/channel) -> BN scale & shift.
    cnt = jnp.float32(N * Ho * Wo)
    s1 = jnp.sum(ssum, axis=(0, 1))
    s2 = jnp.sum(ssq, axis=(0, 1))
    mean = s1 / cnt
    var = s2 / cnt - mean * mean                      # biased variance (train mode)
    rstd = lax.rsqrt(var + eps)
    g = gamma.astype(jnp.float32)
    scale = (g * rstd).reshape(Cout, 1, 1)
    shift = (beta.astype(jnp.float32) - mean * g * rstd).reshape(Cout, 1, 1)

    k2_flops = N * Cout * Ho * Wo * 3
    k2_bytes = 2 * N * Cout * Ho * Wo * 4 + 2 * Cout * 4
    out = pl.pallas_call(
        _bn_relu_kernel,
        grid=(N,),
        in_specs=[
            pl.BlockSpec((1, Cout, Ho, Wo), lambda n: (n, 0, 0, 0)),
            pl.BlockSpec((Cout, 1, 1), lambda n: (0, 0, 0)),
            pl.BlockSpec((Cout, 1, 1), lambda n: (0, 0, 0)),
        ],
        out_specs=pl.BlockSpec((1, Cout, Ho, Wo), lambda n: (n, 0, 0, 0)),
        out_shape=jax.ShapeDtypeStruct((N, Cout, Ho, Wo), jnp.float32),
        compiler_params=cparams,
        cost_estimate=pl.CostEstimate(flops=k2_flops, transcendentals=0,
                                      bytes_accessed=k2_bytes),
    )(y, scale, shift)

    return out


# ---------------------------------------------------------------------------
# pure-JAX reference for correctness check
# ---------------------------------------------------------------------------
def reference_forward(x, w, b, gamma, beta, *, padding=1, stride=1, eps=1e-5):
    N, C, H, W = x.shape
    Uh = jnp.asarray(_bilinear_matrix(H, 2 * H))
    Uw = jnp.asarray(_bilinear_matrix(W, 2 * W))
    up = jnp.einsum('oh,pw,nchw->ncop', Uh, Uw, x)
    y = lax.conv_general_dilated(up, w, (stride, stride),
                                 [(padding, padding), (padding, padding)],
                                 dimension_numbers=('NCHW', 'OIHW', 'NCHW'))
    y = y + b[None, :, None, None]
    mean = jnp.mean(y, axis=(0, 2, 3), keepdims=True)
    var = jnp.mean((y - mean) ** 2, axis=(0, 2, 3), keepdims=True)
    y = gamma[None, :, None, None] * (y - mean) / jnp.sqrt(var + eps) + beta[None, :, None, None]
    return jnp.maximum(y, 0.0)


if __name__ == "__main__":
    key = jax.random.PRNGKey(0)
    k1, k2, k3, k4, k5 = jax.random.split(key, 5)

    # UpsampleBN(in_channels=4, out_channels=8, kernel_size=3, stride=1, padding=1, 'relu')
    N, Cin, H, W = 2, 4, 16, 16
    Cout, K, stride, padding = 8, 3, 1, 1

    x = jax.random.normal(k1, (N, Cin, H, W), jnp.float32)
    w = 0.1 * jax.random.normal(k2, (Cout, Cin, K, K), jnp.float32)
    b = 0.1 * jax.random.normal(k3, (Cout,), jnp.float32)
    gamma = 1.0 + 0.1 * jax.random.normal(k4, (Cout,), jnp.float32)
    beta = 0.1 * jax.random.normal(k5, (Cout,), jnp.float32)

    out = upsample_bn_forward(x, (w, b, gamma, beta),
                              kernel_size=K, stride=stride, padding=padding)
    out = jax.block_until_ready(out)
    assert out.shape == (N, Cout, 2 * H, 2 * W), out.shape

    ref = reference_forward(x, w, b, gamma, beta, padding=padding, stride=stride)
    # bf16 MXU operands -> slightly relaxed tolerance vs. the all-f32 reference.
    np.testing.assert_allclose(np.asarray(out), np.asarray(ref), rtol=2e-2, atol=2e-2)

    print("KERNEL_OK")
</pallas_src>

<mosaic_0001>
module attributes {stable_mosaic.version = 11 : i64} {
  func.func @_upsample_conv_kernel(%arg0: i32, %arg1: memref<1x64x16xbf16, #tpu.memory_space<vmem>>, %arg2: memref<768x64xbf16, #tpu.memory_space<vmem>>, %arg3: memref<3x16x32xbf16, #tpu.memory_space<vmem>>, %arg4: memref<1x8x32x32xf32, #tpu.memory_space<vmem>>, %arg5: memref<1x1x8xf32, #tpu.memory_space<vmem>>, %arg6: memref<1x1x8xf32, #tpu.memory_space<vmem>>) attributes {dimension_semantics = [#tpu.dimension_semantics<parallel>], iteration_bounds = array<i64: 2>, scalar_prefetch = 0 : i64, scratch_operands = 0 : i64, tpu.core_type = #tpu.core_type<tc>, window_params = [{transform_indices = @transform_0, window_bounds = array<i64: 1, 64, 16>}, {pipeline_mode = #tpu.pipeline_mode<synchronous>, transform_indices = @transform_1, window_bounds = array<i64: 768, 64>}, {pipeline_mode = #tpu.pipeline_mode<synchronous>, transform_indices = @transform_2, window_bounds = array<i64: 3, 16, 32>}, {transform_indices = @transform_3, window_bounds = array<i64: 1, 8, 32, 32>}, {transform_indices = @transform_4, window_bounds = array<i64: 1, 1, 8>}, {transform_indices = @transform_5, window_bounds = array<i64: 1, 1, 8>}]} {
    %c0 = arith.constant 0 : index
    %c0_0 = arith.constant 0 : index
    %0 = vector.load %arg2[%c0, %c0_0] : memref<768x64xbf16, #tpu.memory_space<vmem>>, vector<768x64xbf16>
    %c0_1 = arith.constant 0 : index
    %c0_2 = arith.constant 0 : index
    %c0_3 = arith.constant 0 : index
    %1 = vector.load %arg1[%c0_1, %c0_2, %c0_3] : memref<1x64x16xbf16, #tpu.memory_space<vmem>>, vector<1x64x16xbf16>
    %2 = vector.shape_cast %1 : vector<1x64x16xbf16> to vector<64x16xbf16>
    %cst = arith.constant dense<0.000000e+00> : vector<768x16xf32>
    %3 = tpu.matmul %0, %2, %cst {dimension_numbers = #tpu.dot_dimension_numbers<[1], [0], [0], [1], [0, 0, 1, 1], [], []>} : vector<768x64xbf16>, vector<64x16xbf16>, vector<768x16xf32> -> vector<768x16xf32>
    %4 = arith.truncf %3 : vector<768x16xf32> to vector<768x16xbf16>
    %5 = vector.extract_strided_slice %4 {offsets = [0, 0], sizes = [256, 16], strides = [1, 1]} : vector<768x16xbf16> to vector<256x16xbf16>
    %c0_4 = arith.constant 0 : index
    %c0_5 = arith.constant 0 : index
    %c0_6 = arith.constant 0 : index
    %6 = vector.load %arg3[%c0_4, %c0_5, %c0_6] : memref<3x16x32xbf16, #tpu.memory_space<vmem>>, vector<1x16x32xbf16>
    %7 = vector.shape_cast %6 : vector<1x16x32xbf16> to vector<16x32xbf16>
    %cst_7 = arith.constant dense<0.000000e+00> : vector<256x32xf32>
    %8 = tpu.matmul %5, %7, %cst_7 {dimension_numbers = #tpu.dot_dimension_numbers<[1], [0], [0], [1], [0, 0, 1, 1], [], []>} : vector<256x16xbf16>, vector<16x32xbf16>, vector<256x32xf32> -> vector<256x32xf32>
    %9 = vector.extract_strided_slice %4 {offsets = [256, 0], sizes = [256, 16], strides = [1, 1]} : vector<768x16xbf16> to vector<256x16xbf16>
    %c1 = arith.constant 1 : index
    %c0_8 = arith.constant 0 : index
    %c0_9 = arith.constant 0 : index
    %10 = vector.load %arg3[%c1, %c0_8, %c0_9] : memref<3x16x32xbf16, #tpu.memory_space<vmem>>, vector<1x16x32xbf16>
    %11 = vector.shape_cast %10 : vector<1x16x32xbf16> to vector<16x32xbf16>
    %cst_10 = arith.constant dense<0.000000e+00> : vector<256x32xf32>
    %12 = tpu.matmul %9, %11, %cst_10 {dimension_numbers = #tpu.dot_dimension_numbers<[1], [0], [0], [1], [0, 0, 1, 1], [], []>} : vector<256x16xbf16>, vector<16x32xbf16>, vector<256x32xf32> -> vector<256x32xf32>
    %13 = arith.addf %8, %12 : vector<256x32xf32>
    %14 = vector.extract_strided_slice %4 {offsets = [512, 0], sizes = [256, 16], strides = [1, 1]} : vector<768x16xbf16> to vector<256x16xbf16>
    %c2 = arith.constant 2 : index
    %c0_11 = arith.constant 0 : index
    %c0_12 = arith.constant 0 : index
    %15 = vector.load %arg3[%c2, %c0_11, %c0_12] : memref<3x16x32xbf16, #tpu.memory_space<vmem>>, vector<1x16x32xbf16>
    %16 = vector.shape_cast %15 : vector<1x16x32xbf16> to vector<16x32xbf16>
    %cst_13 = arith.constant dense<0.000000e+00> : vector<256x32xf32>
    %17 = tpu.matmul %14, %16, %cst_13 {dimension_numbers = #tpu.dot_dimension_numbers<[1], [0], [0], [1], [0, 0, 1, 1], [], []>} : vector<256x16xbf16>, vector<16x32xbf16>, vector<256x32xf32> -> vector<256x32xf32>
    %18 = arith.addf %13, %17 : vector<256x32xf32>
    %19 = vector.shape_cast %18 : vector<256x32xf32> to vector<8x32x32xf32>
    %cst_14 = arith.constant dense<0.000000e+00> : vector<8x32xf32>
    %20 = vector.multi_reduction <add>, %19, %cst_14 [1] : vector<8x32x32xf32> to vector<8x32xf32>
    %cst_15 = arith.constant dense<0.000000e+00> : vector<8xf32>
    %21 = vector.multi_reduction <add>, %20, %cst_15 [1] : vector<8x32xf32> to vector<8xf32>
    %22 = arith.mulf %19, %19 : vector<8x32x32xf32>
    %cst_16 = arith.constant dense<0.000000e+00> : vector<8x32xf32>
    %23 = vector.multi_reduction <add>, %22, %cst_16 [1] : vector<8x32x32xf32> to vector<8x32xf32>
    %cst_17 = arith.constant dense<0.000000e+00> : vector<8xf32>
    %24 = vector.multi_reduction <add>, %23, %cst_17 [1] : vector<8x32xf32> to vector<8xf32>
    %25 = vector.shape_cast %21 : vector<8xf32> to vector<1x8xf32>
    %c0_18 = arith.constant 0 : index
    %c0_19 = arith.constant 0 : index
    %c0_20 = arith.constant 0 : index
    %26 = vector.load %arg5[%c0_18, %c0_19, %c0_20] : memref<1x1x8xf32, #tpu.memory_space<vmem>>, vector<1x1x8xf32>
    %27 = vector.shape_cast %26 : vector<1x1x8xf32> to vector<1x8xf32>
    %28 = vector.shape_cast %25 : vector<1x8xf32> to vector<1x1x8xf32>
    tpu.vector_store %arg5[%c0_18, %c0_19, %c0_20], %28 {strides = array<i32>} : memref<1x1x8xf32, #tpu.memory_space<vmem>>, vector<1x1x8xf32>,
    %29 = vector.shape_cast %24 : vector<8xf32> to vector<1x8xf32>
    %c0_21 = arith.constant 0 : index
    %c0_22 = arith.constant 0 : index
    %c0_23 = arith.constant 0 : index
    %30 = vector.load %arg6[%c0_21, %c0_22, %c0_23] : memref<1x1x8xf32, #tpu.memory_space<vmem>>, vector<1x1x8xf32>
    %31 = vector.shape_cast %30 : vector<1x1x8xf32> to vector<1x8xf32>
    %32 = vector.shape_cast %29 : vector<1x8xf32> to vector<1x1x8xf32>
    tpu.vector_store %arg6[%c0_21, %c0_22, %c0_23], %32 {strides = array<i32>} : memref<1x1x8xf32, #tpu.memory_space<vmem>>, vector<1x1x8xf32>,
    %c0_24 = arith.constant 0 : index
    %c0_25 = arith.constant 0 : index
    %c0_26 = arith.constant 0 : index
    %c0_27 = arith.constant 0 : index
    %33 = vector.load %arg4[%c0_24, %c0_25, %c0_26, %c0_27] : memref<1x8x32x32xf32, #tpu.memory_space<vmem>>, vector<1x8x32x32xf32>
    %34 = vector.shape_cast %33 : vector<1x8x32x32xf32> to vector<8x32x32xf32>
    %35 = vector.shape_cast %19 : vector<8x32x32xf32> to vector<1x8x32x32xf32>
    tpu.vector_store %arg4[%c0_24, %c0_25, %c0_26, %c0_27], %35 {strides = array<i32>} : memref<1x8x32x32xf32, #tpu.memory_space<vmem>>, vector<1x8x32x32xf32>,
    return
  }
  func.func @transform_0(%arg0: i32) -> (i32, i32, i32) {
    %c0_i32 = arith.constant 0 : i32
    %c0_i32_0 = arith.constant 0 : i32
    %c0_i32_1 = arith.constant 0 : i32
    return %arg0, %c0_i32, %c0_i32_0 : i32, i32, i32
  }
  func.func @transform_1(%arg0: i32) -> (i32, i32) {
    %c0_i32 = arith.constant 0 : i32
    %c0_i32_0 = arith.constant 0 : i32
    %c0_i32_1 = arith.constant 0 : i32
    return %c0_i32, %c0_i32_0 : i32, i32
  }
  func.func @transform_2(%arg0: i32) -> (i32, i32, i32) {
    %c0_i32 = arith.constant 0 : i32
    %c0_i32_0 = arith.constant 0 : i32
    %c0_i32_1 = arith.constant 0 : i32
    %c0_i32_2 = arith.constant 0 : i32
    return %c0_i32, %c0_i32_0, %c0_i32_1 : i32, i32, i32
  }
  func.func @transform_3(%arg0: i32) -> (i32, i32, i32, i32) {
    %c0_i32 = arith.constant 0 : i32
    %c0_i32_0 = arith.constant 0 : i32
    %c0_i32_1 = arith.constant 0 : i32
    %c0_i32_2 = arith.constant 0 : i32
    return %arg0, %c0_i32, %c0_i32_0, %c0_i32_1 : i32, i32, i32, i32
  }
  func.func @transform_4(%arg0: i32) -> (i32, i32, i32) {
    %c0_i32 = arith.constant 0 : i32
    %c0_i32_0 = arith.constant 0 : i32
    %c0_i32_1 = arith.constant 0 : i32
    return %arg0, %c0_i32, %c0_i32_0 : i32, i32, i32
  }
  func.func @transform_5(%arg0: i32) -> (i32, i32, i32) {
    %c0_i32 = arith.constant 0 : i32
    %c0_i32_0 = arith.constant 0 : i32
    %c0_i32_1 = arith.constant 0 : i32
    return %arg0, %c0_i32, %c0_i32_0 : i32, i32, i32
  }
}

</mosaic_0001>

<bundles_post_ra>
// kernel: tpu_custom_call.1
= control target key start
LH: loop header
LB: loop body
LE: loop exit
PB: predicated region body
PF: predicated region fallthrough
CT: control target
= control target key end

     0   :  { %11 = vsyncpa [#allocation3], 0  ;;  %s3951_s0 = inlined_call_operand.vmem [shape: bf16[2,64,16], index: 0, kind: input, shape index: {}]   ;;  %s3952_s1 = inlined_call_operand.vmem [shape: bf16[768,64], index: 1, kind: input, shape index: {}]   ;;  %s3953_s2 = inlined_call_operand.vmem [shape: bf16[3,16,32], index: 2, kind: input, shape index: {}]   ;;  %s3954_s3 = inlined_call_operand.hbm [shape: f32[2,8,32,32], index: 3, kind: output, shape index: {0}]   ;;  %s3955_s4 = inlined_call_operand.hbm [shape: f32[2,1,8], index: 4, kind: output, shape index: {1}]   ;;  %s3956_s5 = inlined_call_operand.hbm [shape: f32[2,1,8], index: 5, kind: output, shape index: {2}]  }
   0x1   :  { %13 = vsyncpa [#allocation3 + $0x1], 0 }
   0x2   :  { %14 = vsyncpa [#allocation5], 0 }
   0x3   :  { %16 = vsyncpa [#allocation5 + $0x1], 0  ;;  %s3211_s18 = smov 0   ;;  %s3213_s19 = smov 0  }
   0x4   :  { %s3215_s20 = smov 0   ;;  %s3217_s21 = smov 0  }
   0x5 LB: > { %s3232_s22 = sadd.s32 4294967295, %s3174_s21   ;;  %s2402_s23 = sadd.s32 4294967294, %s3174_s21   ;;  %s3174_s21 = sphi %s3217_s21, %s3962_s21   ;;  %s3170_s20 = sphi %s3215_s20, %s3961_s20   ;;  %s3166_s19 = sphi %s3213_s19, %s3960_s19   ;;  %s3162_s18 = sphi %s3211_s18, %s3959_s18  }
   0x6   : > { %s3236_s24 = sadd.s32 1, %s3174_s21   ;;  %s97_s25 = sadd.s32 1, %s3170_s20 }
   0x7   : > { %s94_s26 = ssub.s32 %s3174_s21, %s3236_s24  ;;  %p107_p0 = scmp.ne.s32.totalorder %s3170_s20, %s3166_s19 }
   0x8   : > { %p95_p1 = scmp.eq.s32.totalorder %s94_s26, 0  ;;  %p108_p2 = scmp.eq.s32.totalorder %s3232_s22, 1 }
   0x9   : > { %p113_p3 = scmp.ne.s32.totalorder %s3166_s19, %s3162_s18  ;;  %p114_p4 = scmp.eq.s32.totalorder %s2402_s23, 1 }
   0xa   : > { %s3249_s27 = scalar_select %p95_p1, %s3170_s20, %s97_s25  }
   0xb   : > { %p3251_p5 = por %p108_p2, %p107_p0  ;;  %p3255_p6 = por %p114_p4, %p113_p3 }
   0xc   : > { %p2405_p7 = scmp.ge.s32.totalorder %s3174_s21, 1  ;;  %p198_p8 = scmp.lt.s32.totalorder %s3174_s21, 3 }
   0xe   : > { %p199_p9 = pnand %p2405_p7, %p198_p8 }
   0xf   : > { %p234_p10 = scmp.lt.s32.totalorder (!%p199_p9), %s3232_s22, 1  ;;  %v3001_v0 = vld [vmem:[%s3952_s1] sm:$0xff] (!%p199_p9)   ;;  %vm608_vm0 = vcmask (!%p199_p9), 523264   ;;  %v3002_v5 = vld [vmem:[%s3952_s1 + $0x8] sm:$0xff] (!%p199_p9)   ;;  %v3003_v6 = vld [vmem:[%s3952_s1 + $0x10] sm:$0xff] (!%p199_p9)   ;;  %vm1229_vm1 = vcmask (!%p199_p9), 130048  }
  0x10   : > { %202 = sbr.rel (%p199_p9) target bundleno = 928 (0x3a0), region = 32  ;;  %2684 = vmatprep.mubr.msk.bf16.mxu0 (!%p199_p9), %vm608_vm0, %v3001_v0  ;;  %v3004_v7 = vld [vmem:[%s3952_s1 + $0x18] sm:$0xff] (!%p199_p9)   ;;  %v3005_v8 = vld [vmem:[%s3952_s1 + $0x20] sm:$0xff] (!%p199_p9)   ;;  %v3006_v9 = vld [vmem:[%s3952_s1 + $0x28] sm:$0xff] (!%p199_p9)   ;;  %vm1904_vm2 = vcmask (!%p199_p9), 261120   ;;  %vm2017_vm3 = vcmask (!%p199_p9), 1041409  }
  0x11   : > { %v3007_v10 = vld [vmem:[%s3952_s1 + $0x30] sm:$0xff] (!%p199_p9)   ;;  %v3008_v11 = vld [vmem:[%s3952_s1 + $0x38] sm:$0xff] (!%p199_p9)   ;;  %v3009_v12 = vld [vmem:[%s3952_s1 + $0x40] sm:$0xff] (!%p199_p9)   ;;  %vm2019_vm4 = vcmask (!%p199_p9), 1042434   ;;  %vm2021_vm5 = vcmask (!%p199_p9), 1043459   ;;  %vm2023_vm6 = vcmask (!%p199_p9), 1044484  }
  0x12   : > { %v3010_v13 = vld [vmem:[%s3952_s1 + $0x48] sm:$0xff] (!%p199_p9)   ;;  %v3011_v14 = vld [vmem:[%s3952_s1 + $0x50] sm:$0xff] (!%p199_p9)   ;;  %v3012_v15 = vld [vmem:[%s3952_s1 + $0x58] sm:$0xff] (!%p199_p9)   ;;  %vm2025_vm7 = vcmask (!%p199_p9), 1045509   ;;  %vm2027_vm8 = vcmask (!%p199_p9), 1046534   ;;  %vm2029_vm9 = vcmask (!%p199_p9), 1047559  }
  0x13   : > { %v3013_v16 = vld [vmem:[%s3952_s1 + $0x60] sm:$0xff] (!%p199_p9)   ;;  %v3014_v17 = vld [vmem:[%s3952_s1 + $0x68] sm:$0xff] (!%p199_p9)   ;;  %v3015_v18 = vld [vmem:[%s3952_s1 + $0x70] sm:$0xff] (!%p199_p9)   ;;  %s2572_s10 = sshll.u32 (!%p199_p9), %s3232_s22, 12  ;;  %s3176_s17 = smov (!%p199_p9), [#allocation2]  }
  0x14   : > { %v3016_v19 = vld [vmem:[%s3952_s1 + $0x78] sm:$0xff] (!%p199_p9)   ;;  %v3017_v20 = vld [vmem:[%s3952_s1 + $0x80] sm:$0xff] (!%p199_p9)   ;;  %v3018_v21 = vld [vmem:[%s3952_s1 + $0x88] sm:$0xff] (!%p199_p9)   ;;  %s3832_s13 = scalar_lea.hbm (!%p199_p9), %s3954_s3, %s2572_s10  ;;  %s3056_s25 = sshll.u32 (!%p199_p9), %s3176_s17, 4  ;;  %s3057_s25 = int_to_ptr.vmem [resolvable:$false] %s3056_s25 }
  0x15   : > { %v3019_v22 = vld [vmem:[%s3952_s1 + $0x90] sm:$0xff] (!%p199_p9)   ;;  %v3020_v23 = vld [vmem:[%s3952_s1 + $0x98] sm:$0xff] (!%p199_p9)   ;;  %v3021_v24 = vld [vmem:[%s3952_s1 + $0xa0] sm:$0xff] (!%p199_p9)   ;;  %s3058_s26 = scalar_lea.vmem (!%p199_p9), %s3057_s25, 8192 }
  0x16   : > { %v3022_v25 = vld [vmem:[%s3952_s1 + $0xa8] sm:$0xff] (!%p199_p9)   ;;  %v3023_v26 = vld [vmem:[%s3952_s1 + $0xb0] sm:$0xff] (!%p199_p9)   ;;  %v3024_v27 = vld [vmem:[%s3952_s1 + $0xb8] sm:$0xff] (!%p199_p9)  }
  0x17   : > { %s235_s7 = scalar_select %p234_p10, %s3232_s22, 1  ;;  %v3025_v28 = vld [vmem:[%s3952_s1 + $0xc0] sm:$0xff]   ;;  %v3026_v29 = vld [vmem:[%s3952_s1 + $0xc8] sm:$0xff]   ;;  %v3027_v30 = vld [vmem:[%s3952_s1 + $0xd0] sm:$0xff]  }
  0x18   : > { %v3028_v31 = vld [vmem:[%s3952_s1 + $0xd8] sm:$0xff]   ;;  %v3029_v32 = vld [vmem:[%s3952_s1 + $0xe0] sm:$0xff]   ;;  %v3030_v33 = vld [vmem:[%s3952_s1 + $0xe8] sm:$0xff]  }
  0x19   : > { %s2571_s8 = sshll.u32 %s235_s7, 5  ;;  %v3031_v34 = vld [vmem:[%s3952_s1 + $0xf0] sm:$0xff]   ;;  %v3032_v35 = vld [vmem:[%s3952_s1 + $0xf8] sm:$0xff]   ;;  %v3033_v36 = vld [vmem:[%s3952_s1 + $0x100] sm:$0xff]   ;;  %s3677_s7 = sand.u32 1, %s3166_s19  }
  0x1a   : > { %s238_s11 = scalar_lea.vmem %s3951_s0, %s2571_s8  ;;  %v3034_v37 = vld [vmem:[%s3952_s1 + $0x108] sm:$0xff]   ;;  %v3035_v38 = vld [vmem:[%s3952_s1 + $0x110] sm:$0xff]   ;;  %v3036_v39 = vld [vmem:[%s3952_s1 + $0x118] sm:$0xff]   ;;  %s2406_s8 = sshll.u32 %s3677_s7, 8 }
  0x1b   : > { %v2997_v1 = vld [vmem:[%s238_s11] sm:$0xff]   ;;  %v2998_v2 = vld [vmem:[%s238_s11 + $0x8] sm:$0xff]   ;;  %v2999_v3 = vld [vmem:[%s238_s11 + $0x10] sm:$0xff]   ;;  %s3680_s9 = scalar_lea.vmem [#allocation2], %s2406_s8  ;;  %s2240_s15 = scalar_lea.sflag [#allocation3], %s3677_s7 }
  0x1c   : > { %2676 = vmatprep.subr.bf16.mxu0 %v2997_v1  ;;  %v3000_v4 = vld [vmem:[%s238_s11 + $0x18] sm:$0xff]   ;;  %v3037_v40 = vld [vmem:[%s3952_s1 + $0x120] sm:$0xff]   ;;  %v3038_v41 = vld [vmem:[%s3952_s1 + $0x128] sm:$0xff]   ;;  %s2261_s14 = sshll.u32 %s3680_s9, 4  ;;  %s3835_s14 = int_to_ptr.vmem [resolvable:$true] %s2261_s14 }
  0x1d   : > { %2677 = vmatpush3.bf16.msra.mxu0 %v2997_v1  ;;  %v3039_v42 = vld [vmem:[%s3952_s1 + $0x130] sm:$0xff]   ;;  %v3040_v43 = vld [vmem:[%s3952_s1 + $0x138] sm:$0xff]   ;;  %v3049_v44 = vld [vmem:[%s3953_s2 + $0x8] sm:$0xff]   ;;  %s3052_s16 = scalar_lea.vmem %s3835_s14, 4096  ;;  %p3059_p0 = scmp.lt.s32.totalorder %s3835_s14, %s3057_s25 }
  0x1e   : > { %2678 = vmatprep.subr.bf16.mxu0 %v2998_v2  ;;  %v3041_v45 = vld [vmem:[%s3952_s1 + $0x140] sm:$0xff]   ;;  %2780 = vmatprep.subr.bf16.mxu1 %v3049_v44  ;;  %v3042_v47 = vld [vmem:[%s3952_s1 + $0x148] sm:$0xff]   ;;  %v3043_v48 = vld [vmem:[%s3952_s1 + $0x150] sm:$0xff]   ;;  %p3053_p11 = scmp.ne.s32.totalorder %s3835_s14, %s3052_s16  ;;  %p3060_p1 = scmp.lt.s32.totalorder %s3058_s26, %s3052_s16 }
  0x1f   : > { %2781 = vmatpush3.bf16.msra.mxu1 %v3049_v44  ;;  %v3436_v46 = vld [vmem:[%s3953_s2] sm:$0xff]   ;;  %v3044_v49 = vld [vmem:[%s3952_s1 + $0x158] sm:$0xff]   ;;  %v3046_v51 = vld [vmem:[%s3952_s1 + $0x168] sm:$0xff]  }
  0x20   : > { %2814 = vmatprep.subr.bf16.mxu1 %v3436_v46  ;;  %v3045_v50 = vld [vmem:[%s3952_s1 + $0x160] sm:$0xff]   ;;  %v3047_v52 = vld [vmem:[%s3952_s1 + $0x170] sm:$0xff]   ;;  %v3048_v53 = vld [vmem:[%s3952_s1 + $0x178] sm:$0xff]   ;;  %p3054_p12 = pnand %p3053_p11, %p3251_p5  ;;  %p3061_p2 = por %p3060_p1, %p3059_p0 }
  0x21   : > { %2679 = vmatpush3.bf16.msra.mxu0 %v2998_v2  ;;  %v3566_v44 = vld [vmem:[%s3953_s2 + $0x10] sm:$0xff]  }
  0x22   : > { %2680 = vmatprep.subr.bf16.mxu0 %v2999_v3  ;;  %p3055_p13 = pneg %p3054_p12 }
  0x24   : > { %p3062_p3 = pnand %p3061_p2, %p3055_p13 }
  0x25   : > { %2681 = vmatpush3.bf16.msra.mxu0 %v2999_v3 }
  0x26   : > { %2682 = vmatprep.subr.bf16.mxu0 %v3000_v4 }
  0x29   : > { %2683 = vmatpush3.bf16.msra.mxu0 %v3000_v4 }
  0x2c   : > { %2685 = vmatmul.mubr.msk.bf16.vlgmr.msra.gmra.mrb[0].mxu0 %vm608_vm0, %v3002_v5 }
  0x2d   : > { %2688 = vmatprep.mubr.msk.bf16.mxu0 %vm608_vm0, %v3003_v6 }
  0x34   : > { %2689 = vmatmul.mubr.msk.bf16.gmra.mrb[4].mxu0 %vm608_vm0, %v3004_v7 }
  0x35   : > { %2692 = vmatprep.mubr.msk.bf16.mxu0 %vm608_vm0, %v3005_v8 }
  0x3c   : > { %2693 = vmatmul.mubr.msk.bf16.gmra.mrb[8].mxu0 %vm608_vm0, %v3006_v9 }
  0x3d   : > { %2696 = vmatprep.mubr.msk.bf16.mxu0 %vm608_vm0, %v3007_v10 }
  0x44   : > { %2697 = vmatmul.mubr.msk.bf16.gmra.mrb[12].mxu0 %vm608_vm0, %v3008_v11 }
  0x45   : > { %2700 = vmatprep.mubr.msk.bf16.mxu0 %vm608_vm0, %v3009_v12 }
  0x4c   : > { %2701 = vmatmul.mubr.msk.bf16.gmra.mrb[16].mxu0 %vm608_vm0, %v3010_v13 }
  0x4d   : > { %2704 = vmatprep.mubr.msk.bf16.mxu0 %vm608_vm0, %v3011_v14 }
  0x54   : > { %2705 = vmatmul.mubr.msk.bf16.gmra.mrb[20].mxu0 %vm608_vm0, %v3012_v15 }
  0x55   : > { %2708 = vmatprep.mubr.msk.bf16.mxu0 %vm608_vm0, %v3013_v16 }
  0x5c   : > { %2709 = vmatmul.mubr.msk.bf16.gmra.mrb[24].mxu0 %vm608_vm0, %v3014_v17 }
  0x5d   : > { %2712 = vmatprep.mubr.msk.bf16.mxu0 %vm608_vm0, %v3015_v18 }
  0x64   : > { %2713 = vmatmul.mubr.msk.bf16.gmra.mrb[28].mxu0 %vm608_vm0, %v3016_v19 }
  0x65   : > { %2716 = vmatprep.mubr.msk.bf16.mxu0 %vm608_vm0, %v3017_v20 }
  0x6c   : > { %2717 = vmatmul.mubr.msk.bf16.gmra.mrb[32].mxu0 %vm608_vm0, %v3018_v21 }
  0x6d   : > { %2720 = vmatprep.mubr.msk.bf16.mxu0 %vm608_vm0, %v3019_v22 }
  0x74   : > { %2721 = vmatmul.mubr.msk.bf16.gmra.mrb[36].mxu0 %vm608_vm0, %v3020_v23 }
  0x75   : > { %2724 = vmatprep.mubr.msk.bf16.mxu0 %vm608_vm0, %v3021_v24 }
  0x7c   : > { %2725 = vmatmul.mubr.msk.bf16.gmra.mrb[40].mxu0 %vm608_vm0, %v3022_v25 }
  0x7d   : > { %2728 = vmatprep.mubr.msk.bf16.mxu0 %vm608_vm0, %v3023_v26 }
  0x84   : > { %2729 = vmatmul.mubr.msk.bf16.gmra.mrb[44].mxu0 %vm608_vm0, %v3024_v27 }
  0x85   : > { %2732 = vmatprep.mubr.msk.bf16.mxu0 %vm608_vm0, %v3025_v28 }
  0x8c   : > { %2733 = vmatmul.mubr.msk.bf16.gmra.mrb[48].mxu0 %vm608_vm0, %v3026_v29 }
  0x8d   : > { %2736 = vmatprep.mubr.msk.bf16.mxu0 %vm608_vm0, %v3027_v30 }
  0x94   : > { %2737 = vmatmul.mubr.msk.bf16.gmra.mrb[52].mxu0 %vm608_vm0, %v3028_v31 }
  0x95   : > { %2740 = vmatprep.mubr.msk.bf16.mxu0 %vm608_vm0, %v3029_v32 }
  0x9c   : > { %2741 = vmatmul.mubr.msk.bf16.gmra.mrb[56].mxu0 %vm608_vm0, %v3030_v33 }
  0x9d   : > { %2744 = vmatprep.mubr.msk.bf16.mxu0 %vm608_vm0, %v3031_v34 }
  0xa4   : > { %2745 = vmatmul.mubr.msk.bf16.gmra.mrb[60].mxu0 %vm608_vm0, %v3032_v35 }
  0xa5   : > { %2748 = vmatprep.mubr.msk.bf16.mxu0 %vm608_vm0, %v3033_v36 }
  0xac   : > { %2749 = vmatmul.mubr.msk.bf16.gmra.mrb[64].mxu0 %vm608_vm0, %v3034_v37 }
  0xad   : > { %2752 = vmatprep.mubr.msk.bf16.mxu0 %vm608_vm0, %v3035_v38 }
  0xb4   : > { %2753 = vmatmul.mubr.msk.bf16.gmra.mrb[68].mxu0 %vm608_vm0, %v3036_v39 }
  0xb5   : > { %2756 = vmatprep.mubr.msk.bf16.mxu0 %vm608_vm0, %v3037_v40 }
  0xbc   : > { %2757 = vmatmul.mubr.msk.bf16.gmra.mrb[72].mxu0 %vm608_vm0, %v3038_v41 }
  0xbd   : > { %2760 = vmatprep.mubr.msk.bf16.mxu0 %vm608_vm0, %v3039_v42 }
  0xc4   : > { %2761 = vmatmul.mubr.msk.bf16.gmra.mrb[76].mxu0 %vm608_vm0, %v3040_v43 }
  0xc5   : > { %2764 = vmatprep.mubr.msk.bf16.mxu0 %vm608_vm0, %v3041_v45 }
  0xcc   : > { %2765 = vmatmul.mubr.msk.bf16.gmra.mrb[80].mxu0 %vm608_vm0, %v3042_v47 }
  0xcd   : > { %2768 = vmatprep.mubr.msk.bf16.mxu0 %vm608_vm0, %v3043_v48 }
  0xd4   : > { %2769 = vmatmul.mubr.msk.bf16.gmra.mrb[84].mxu0 %vm608_vm0, %v3044_v49 }
  0xd5   : > { %2772 = vmatprep.mubr.msk.bf16.mxu0 %vm608_vm0, %v3045_v50 }
  0xdc   : > { %2773 = vmatmul.mubr.msk.bf16.gmra.mrb[88].mxu0 %vm608_vm0, %v3046_v51 }
  0xdd   : > { %2776 = vmatprep.mubr.msk.bf16.mxu0 %vm608_vm0, %v3047_v52 }
  0xe4   : > { %2777 = vmatmul.mubr.msk.bf16.gmra.mrb[92].mxu0 %vm608_vm0, %v3048_v53 }
  0xff   : > { %v3467_v54 = vpop.f32.mrb[0].mxu0 }
 0x100   : > { %v3469_v55 = vpop.f32.mrb[1].mxu0 }
 0x101   : > { %v3471_v56 = vpop.f32.mrb[2].mxu0 }
 0x102   : > { %v1171_v57 = vpack.c.bf16 %v3471_v56, %v3467_v54  ;;  %v3475_v58 = vpop.f32.mrb[3].mxu0 }
 0x103   : > { %v1170_v59 = vpack.c.bf16 %v3475_v58, %v3469_v55 }
 0x107   : > { %v3479_v60 = vpop.f32.mrb[4].mxu0 }
 0x108   : > { %v3481_v61 = vpop.f32.mrb[5].mxu0 }
 0x109   : > { %v3483_v62 = vpop.f32.mrb[6].mxu0 }
 0x10a   : > { %v1173_v63 = vpack.c.bf16 %v3483_v62, %v3479_v60  ;;  %v3487_v0 = vpop.f32.mrb[7].mxu0 }
 0x10b   : > { %v1172_v1 = vpack.c.bf16 %v3487_v0, %v3481_v61 }
 0x10f   : > { %v3491_v2 = vpop.f32.mrb[8].mxu0 }
 0x110   : > { %v3493_v3 = vpop.f32.mrb[9].mxu0 }
 0x111   : > { %v3495_v4 = vpop.f32.mrb[10].mxu0 }
 0x112   : > { %v1175_v5 = vpack.c.bf16 %v3495_v4, %v3491_v2  ;;  %v3499_v6 = vpop.f32.mrb[11].mxu0 }
 0x113   : > { %v1174_v7 = vpack.c.bf16 %v3499_v6, %v3493_v3 }
 0x117   : > { %v3503_v8 = vpop.f32.mrb[12].mxu0 }
 0x118   : > { %v3505_v9 = vpop.f32.mrb[13].mxu0 }
 0x119   : > { %v3507_v10 = vpop.f32.mrb[14].mxu0 }
 0x11a   : > { %v1177_v11 = vpack.c.bf16 %v3507_v10, %v3503_v8  ;;  %v3511_v12 = vpop.f32.mrb[15].mxu0 }
 0x11b   : > { %v1176_v13 = vpack.c.bf16 %v3511_v12, %v3505_v9 }
 0x11f   : > { %v3515_v14 = vpop.f32.mrb[16].mxu0 }
 0x120   : > { %v3517_v15 = vpop.f32.mrb[17].mxu0 }
 0x121   : > { %v3519_v16 = vpop.f32.mrb[18].mxu0 }
 0x122   : > { %v1179_v17 = vpack.c.bf16 %v3519_v16, %v3515_v14  ;;  %v3523_v18 = vpop.f32.mrb[19].mxu0 }
 0x123   : > { %v1178_v19 = vpack.c.bf16 %v3523_v18, %v3517_v15 }
 0x127   : > { %v3527_v20 = vpop.f32.mrb[20].mxu0 }
 0x128   : > { %v3529_v21 = vpop.f32.mrb[21].mxu0 }
 0x129   : > { %v3531_v22 = vpop.f32.mrb[22].mxu0 }
 0x12a   : > { %v1181_v23 = vpack.c.bf16 %v3531_v22, %v3527_v20  ;;  %v3535_v24 = vpop.f32.mrb[23].mxu0 }
 0x12b   : > { %v1180_v25 = vpack.c.bf16 %v3535_v24, %v3529_v21 }
 0x12f   : > { %v3539_v26 = vpop.f32.mrb[24].mxu0 }
 0x130   : > { %v3541_v27 = vpop.f32.mrb[25].mxu0 }
 0x131   : > { %v3543_v28 = vpop.f32.mrb[26].mxu0 }
 0x132   : > { %v1183_v29 = vpack.c.bf16 %v3543_v28, %v3539_v26  ;;  %v3547_v30 = vpop.f32.mrb[27].mxu0 }
 0x133   : > { %v1182_v31 = vpack.c.bf16 %v3547_v30, %v3541_v27 }
 0x137   : > { %v3551_v32 = vpop.f32.mrb[28].mxu0 }
 0x138   : > { %v3553_v33 = vpop.f32.mrb[29].mxu0 }
 0x139   : > { %v3555_v34 = vpop.f32.mrb[30].mxu0 }
 0x13a   : > { %v1185_v35 = vpack.c.bf16 %v3555_v34, %v3551_v32  ;;  %v3559_v36 = vpop.f32.mrb[31].mxu0 }
 0x13b   : > { %v1184_v37 = vpack.c.bf16 %v3559_v36, %v3553_v33 }
 0x13f   : > { %v2718_v38 = vpop.f32.mrb[32].mxu0 }
 0x140   : > { %v915_v39 = vpop.f32.mrb[33].mxu0 }
 0x141   : > { %v2719_v40 = vpop.f32.mrb[34].mxu0 }
 0x142   : > { %v1187_v41 = vpack.c.bf16 %v2719_v40, %v2718_v38  ;;  %v918_v42 = vpop.f32.mrb[35].mxu0 }
 0x143   : > { %v1186_v43 = vpack.c.bf16 %v918_v42, %v915_v39 }
 0x145   : > { %2782 = vmatprep.mubr.msk.bf16.mxu1 %vm1229_vm1, %v1186_v43 }
 0x146   : > { %2783 = vmatmul.mubr.msk.bf16.vlgmr.msra.gmra.mrb[0].mxu1 %vm1229_vm1, %v1187_v41 }
 0x147   : > { %2815 = vmatpush3.bf16.msra.mxu1 %v3436_v46  ;;  %v2722_v45 = vpop.f32.mrb[36].mxu0 }
 0x148   : > { %v931_v47 = vpop.f32.mrb[37].mxu0  ;;  %2848 = vmatprep.subr.bf16.mxu1 %v3566_v44 }
 0x149   : > { %v2723_v48 = vpop.f32.mrb[38].mxu0 }
 0x14a   : > { %v1189_v49 = vpack.c.bf16 %v2723_v48, %v2722_v45  ;;  %v934_v50 = vpop.f32.mrb[39].mxu0 }
 0x14b   : > { %v1188_v51 = vpack.c.bf16 %v934_v50, %v931_v47 }
 0x14d   : > { %2786 = vmatprep.mubr.msk.bf16.mxu1 %vm1229_vm1, %v1188_v51 }
 0x14e   : > { %2787 = vmatmul.mubr.msk.bf16.gmra.mrb[4].mxu1 %vm1229_vm1, %v1189_v49 }
 0x14f   : > { %v2726_v52 = vpop.f32.mrb[40].mxu0 }
 0x150   : > { %v947_v53 = vpop.f32.mrb[41].mxu0 }
 0x151   : > { %v2727_v38 = vpop.f32.mrb[42].mxu0 }
 0x152   : > { %v1191_v39 = vpack.c.bf16 %v2727_v38, %v2726_v52  ;;  %v950_v40 = vpop.f32.mrb[43].mxu0 }
 0x153   : > { %v1190_v41 = vpack.c.bf16 %v950_v40, %v947_v53 }
 0x155   : > { %2790 = vmatprep.mubr.msk.bf16.mxu1 %vm1229_vm1, %v1190_v41 }
 0x156   : > { %2791 = vmatmul.mubr.msk.bf16.gmra.mrb[8].mxu1 %vm1229_vm1, %v1191_v39 }
 0x157   : > { %v2730_v46 = vpop.f32.mrb[44].mxu0 }
 0x158   : > { %v963_v42 = vpop.f32.mrb[45].mxu0 }
 0x159   : > { %v2731_v43 = vpop.f32.mrb[46].mxu0 }
 0x15a   : > { %v1193_v45 = vpack.c.bf16 %v2731_v43, %v2730_v46  ;;  %v966_v48 = vpop.f32.mrb[47].mxu0 }
 0x15b   : > { %v1192_v47 = vpack.c.bf16 %v966_v48, %v963_v42 }
 0x15d   : > { %2794 = vmatprep.mubr.msk.bf16.mxu1 %vm1229_vm1, %v1192_v47 }
 0x15e   : > { %2795 = vmatmul.mubr.msk.bf16.gmra.mrb[12].mxu1 %vm1229_vm1, %v1193_v45 }
 0x15f   : > { %v2734_v49 = vpop.f32.mrb[48].mxu0 }
 0x160   : > { %v979_v50 = vpop.f32.mrb[49].mxu0 }
 0x161   : > { %v2735_v51 = vpop.f32.mrb[50].mxu0 }
 0x162   : > { %v1195_v52 = vpack.c.bf16 %v2735_v51, %v2734_v49  ;;  %v982_v38 = vpop.f32.mrb[51].mxu0 }
 0x163   : > { %v1194_v53 = vpack.c.bf16 %v982_v38, %v979_v50 }
 0x165   : > { %2798 = vmatprep.mubr.msk.bf16.mxu1 %vm1229_vm1, %v1194_v53 }
 0x166   : > { %2799 = vmatmul.mubr.msk.bf16.gmra.mrb[16].mxu1 %vm1229_vm1, %v1195_v52 }
 0x167   : > { %v2738_v39 = vpop.f32.mrb[52].mxu0 }
 0x168   : > { %v995_v40 = vpop.f32.mrb[53].mxu0 }
 0x169   : > { %v2739_v41 = vpop.f32.mrb[54].mxu0 }
 0x16a   : > { %v1197_v46 = vpack.c.bf16 %v2739_v41, %v2738_v39  ;;  %v998_v43 = vpop.f32.mrb[55].mxu0 }
 0x16b   : > { %v1196_v42 = vpack.c.bf16 %v998_v43, %v995_v40 }
 0x16d   : > { %2802 = vmatprep.mubr.msk.bf16.mxu1 %vm1229_vm1, %v1196_v42 }
 0x16e   : > { %2803 = vmatmul.mubr.msk.bf16.gmra.mrb[20].mxu1 %vm1229_vm1, %v1197_v46 }
 0x16f   : > { %v2742_v45 = vpop.f32.mrb[56].mxu0 }
 0x170   : > { %v1011_v48 = vpop.f32.mrb[57].mxu0 }
 0x171   : > { %v2743_v47 = vpop.f32.mrb[58].mxu0 }
 0x172   : > { %v1199_v49 = vpack.c.bf16 %v2743_v47, %v2742_v45  ;;  %v1014_v51 = vpop.f32.mrb[59].mxu0 }
 0x173   : > { %v1198_v50 = vpack.c.bf16 %v1014_v51, %v1011_v48 }
 0x175   : > { %2806 = vmatprep.mubr.msk.bf16.mxu1 %vm1229_vm1, %v1198_v50 }
 0x176   : > { %2807 = vmatmul.mubr.msk.bf16.gmra.mrb[24].mxu1 %vm1229_vm1, %v1199_v49 }
 0x177   : > { %v2746_v52 = vpop.f32.mrb[60].mxu0 }
 0x178   : > { %v1027_v38 = vpop.f32.mrb[61].mxu0 }
 0x179   : > { %v2747_v53 = vpop.f32.mrb[62].mxu0 }
 0x17a   : > { %v1201_v39 = vpack.c.bf16 %v2747_v53, %v2746_v52  ;;  %v1030_v41 = vpop.f32.mrb[63].mxu0 }
 0x17b   : > { %v1200_v40 = vpack.c.bf16 %v1030_v41, %v1027_v38 }
 0x17d   : > { %2810 = vmatprep.mubr.msk.bf16.mxu1 %vm1229_vm1, %v1200_v40 }
 0x17e   : > { %2811 = vmatmul.mubr.msk.bf16.gmra.mrb[28].mxu1 %vm1229_vm1, %v1201_v39 }
 0x17f   : > { %2816 = vmatprep.mubr.msk.bf16.mxu1 %vm1229_vm1, %v1170_v59  ;;  %v3590_v46 = vpop.f32.mrb[64].mxu0 }
 0x180   : > { %v3592_v43 = vpop.f32.mrb[65].mxu0 }
 0x181   : > { %v3594_v42 = vpop.f32.mrb[66].mxu0 }
 0x182   : > { %v1203_v45 = vpack.c.bf16 %v3594_v42, %v3590_v46  ;;  %v1046_v48 = vpop.f32.mrb[67].mxu0 }
 0x183   : > { %v1202_v47 = vpack.c.bf16 %v1046_v48, %v3592_v43 }
 0x186   : > { %2817 = vmatmul.mubr.msk.bf16.vlgmr.msra.gmra.mrb[0].mxu1 %vm1229_vm1, %v1171_v57 }
 0x187   : > { %2849 = vmatpush3.bf16.msra.mxu1 %v3566_v44  ;;  %2820 = vmatprep.mubr.msk.bf16.mxu1 %vm1229_vm1, %v1172_v1  ;;  %v2754_v55 = vpop.f32.mrb[68].mxu0 }
 0x188   : > { %v1059_v58 = vpop.f32.mrb[69].mxu0 }
 0x189   : > { %v2755_v59 = vpop.f32.mrb[70].mxu0 }
 0x18a   : > { %v1205_v49 = vpack.c.bf16 %v2755_v59, %v2754_v55  ;;  %v1062_v51 = vpop.f32.mrb[71].mxu0 }
 0x18b   : > { %v1204_v50 = vpack.c.bf16 %v1062_v51, %v1059_v58 }
 0x18e   : > { %2821 = vmatmul.mubr.msk.bf16.gmra.mrb[4].mxu1 %vm1229_vm1, %v1173_v63 }
 0x18f   : > { %2824 = vmatprep.mubr.msk.bf16.mxu1 %vm1229_vm1, %v1174_v7  ;;  %v2758_v54 = vpop.f32.mrb[72].mxu0 }
 0x190   : > { %v1075_v56 = vpop.f32.mrb[73].mxu0 }
 0x191   : > { %v2759_v57 = vpop.f32.mrb[74].mxu0 }
 0x192   : > { %v1207_v61 = vpack.c.bf16 %v2759_v57, %v2758_v54  ;;  %v1078_v0 = vpop.f32.mrb[75].mxu0 }
 0x193   : > { %v1206_v1 = vpack.c.bf16 %v1078_v0, %v1075_v56 }
 0x196   : > { %2825 = vmatmul.mubr.msk.bf16.gmra.mrb[8].mxu1 %vm1229_vm1, %v1175_v5 }
 0x197   : > { %2828 = vmatprep.mubr.msk.bf16.mxu1 %vm1229_vm1, %v1176_v13  ;;  %v2762_v60 = vpop.f32.mrb[76].mxu0 }
 0x198   : > { %v1091_v62 = vpop.f32.mrb[77].mxu0 }
 0x199   : > { %v2763_v63 = vpop.f32.mrb[78].mxu0 }
 0x19a   : > { %v1209_v3 = vpack.c.bf16 %v2763_v63, %v2762_v60  ;;  %v1094_v6 = vpop.f32.mrb[79].mxu0 }
 0x19b   : > { %v1208_v7 = vpack.c.bf16 %v1094_v6, %v1091_v62 }
 0x19e   : > { %2829 = vmatmul.mubr.msk.bf16.gmra.mrb[12].mxu1 %vm1229_vm1, %v1177_v11 }
 0x19f   : > { %2832 = vmatprep.mubr.msk.bf16.mxu1 %vm1229_vm1, %v1178_v19  ;;  %v2766_v2 = vpop.f32.mrb[80].mxu0 }
 0x1a0   : > { %v1107_v4 = vpop.f32.mrb[81].mxu0 }
 0x1a1   : > { %v2767_v5 = vpop.f32.mrb[82].mxu0 }
 0x1a2   : > { %v1211_v9 = vpack.c.bf16 %v2767_v5, %v2766_v2  ;;  %v1110_v12 = vpop.f32.mrb[83].mxu0 }
 0x1a3   : > { %v1210_v13 = vpack.c.bf16 %v1110_v12, %v1107_v4 }
 0x1a6   : > { %2833 = vmatmul.mubr.msk.bf16.gmra.mrb[16].mxu1 %vm1229_vm1, %v1179_v17 }
 0x1a7   : > { %2836 = vmatprep.mubr.msk.bf16.mxu1 %vm1229_vm1, %v1180_v25  ;;  %v2770_v8 = vpop.f32.mrb[84].mxu0 }
 0x1a8   : > { %v1123_v10 = vpop.f32.mrb[85].mxu0 }
 0x1a9   : > { %v2771_v11 = vpop.f32.mrb[86].mxu0 }
 0x1aa   : > { %v1213_v15 = vpack.c.bf16 %v2771_v11, %v2770_v8  ;;  %v1126_v18 = vpop.f32.mrb[87].mxu0 }
 0x1ab   : > { %v1212_v19 = vpack.c.bf16 %v1126_v18, %v1123_v10 }
 0x1ae   : > { %2837 = vmatmul.mubr.msk.bf16.gmra.mrb[20].mxu1 %vm1229_vm1, %v1181_v23 }
 0x1af   : > { %2840 = vmatprep.mubr.msk.bf16.mxu1 %vm1229_vm1, %v1182_v31  ;;  %v2774_v14 = vpop.f32.mrb[88].mxu0 }
 0x1b0   : > { %v1139_v16 = vpop.f32.mrb[89].mxu0 }
 0x1b1   : > { %v2775_v17 = vpop.f32.mrb[90].mxu0 }
 0x1b2   : > { %v1215_v21 = vpack.c.bf16 %v2775_v17, %v2774_v14  ;;  %v1142_v24 = vpop.f32.mrb[91].mxu0 }
 0x1b3   : > { %v1214_v25 = vpack.c.bf16 %v1142_v24, %v1139_v16 }
 0x1b6   : > { %2841 = vmatmul.mubr.msk.bf16.gmra.mrb[24].mxu1 %vm1229_vm1, %v1183_v29 }
 0x1b7   : > { %2844 = vmatprep.mubr.msk.bf16.mxu1 %vm1229_vm1, %v1184_v37  ;;  %v2778_v20 = vpop.f32.mrb[92].mxu0 }
 0x1b8   : > { %v1155_v22 = vpop.f32.mrb[93].mxu0 }
 0x1b9   : > { %v2779_v23 = vpop.f32.mrb[94].mxu0 }
 0x1ba   : > { %v1217_v27 = vpack.c.bf16 %v2779_v23, %v2778_v20  ;;  %v1158_v30 = vpop.f32.mrb[95].mxu0 }
 0x1bb   : > { %v1216_v31 = vpack.c.bf16 %v1158_v30, %v1155_v22 }
 0x1be   : > { %2845 = vmatmul.mubr.msk.bf16.gmra.mrb[28].mxu1 %vm1229_vm1, %v1185_v35 }
 0x1bf   : > { %2850 = vmatprep.mubr.msk.bf16.mxu1 %vm1229_vm1, %v1202_v47 }
 0x1c6   : > { %2851 = vmatmul.mubr.msk.bf16.vlgmr.msra.gmra.mrb[0].mxu1 %vm1229_vm1, %v1203_v45 }
 0x1c7   : > { %2854 = vmatprep.mubr.msk.bf16.mxu1 %vm1229_vm1, %v1204_v50 }
 0x1ce   : > { %2855 = vmatmul.mubr.msk.bf16.gmra.mrb[4].mxu1 %vm1229_vm1, %v1205_v49 }
 0x1cf   : > { %2858 = vmatprep.mubr.msk.bf16.mxu1 %vm1229_vm1, %v1206_v1 }
 0x1d6   : > { %2859 = vmatmul.mubr.msk.bf16.gmra.mrb[8].mxu1 %vm1229_vm1, %v1207_v61 }
 0x1d7   : > { %2862 = vmatprep.mubr.msk.bf16.mxu1 %vm1229_vm1, %v1208_v7 }
 0x1de   : > { %2863 = vmatmul.mubr.msk.bf16.gmra.mrb[12].mxu1 %vm1229_vm1, %v1209_v3 }
 0x1df   : > { %2866 = vmatprep.mubr.msk.bf16.mxu1 %vm1229_vm1, %v1210_v13 }
 0x1e6   : > { %2867 = vmatmul.mubr.msk.bf16.gmra.mrb[16].mxu1 %vm1229_vm1, %v1211_v9 }
 0x1e7   : > { %2870 = vmatprep.mubr.msk.bf16.mxu1 %vm1229_vm1, %v1212_v19 }
 0x1ee   : > { %2871 = vmatmul.mubr.msk.bf16.gmra.mrb[20].mxu1 %vm1229_vm1, %v1213_v15 }
 0x1ef   : > { %2874 = vmatprep.mubr.msk.bf16.mxu1 %vm1229_vm1, %v1214_v25 }
 0x1f6   : > { %2875 = vmatmul.mubr.msk.bf16.gmra.mrb[24].mxu1 %vm1229_vm1, %v1215_v21 }
 0x1f7   : > { %2878 = vmatprep.mubr.msk.bf16.mxu1 %vm1229_vm1, %v1216_v31 }
 0x1fe   : > { %2879 = vmatmul.mubr.msk.bf16.gmra.mrb[28].mxu1 %vm1229_vm1, %v1217_v27 }
 0x299   : > { %v2852_v26 = vpop.f32.mrb[0].mxu1 }
 0x29a   : > { %2209 = vst.msk [vmem:[%s3680_s9 + $0x10] sm:$0xff] %vm1904_vm2, %v2852_v26  ;;  %v1745_v28 = vpop.f32.mrb[1].mxu1  ;;  %v2037_v34 = vmul.f32 %v2852_v26, %v2852_v26  ;;  %v1908_v52 = vsel %vm1904_vm2, %v2852_v26, 0.0 }
 0x29b   : > { %v2035_v29 = vmul.f32 %v1745_v28, %v1745_v28  ;;  %2207 = vst.msk [vmem:[%s3680_s9] sm:$0xff] %vm1904_vm2, %v1745_v28  ;;  %v2853_v32 = vpop.f32.mrb[2].mxu1  ;;  %v1905_v35 = vsel %vm1904_vm2, %v1745_v28, 0.0 }
 0x29c   : > { %2210 = vst.msk [vmem:[%s3680_s9 + $0x18] sm:$0xff] %vm1904_vm2, %v2853_v32  ;;  %v1748_v33 = vpop.f32.mrb[3].mxu1  ;;  %v2038_v53 = vmul.f32 %v2853_v32, %v2853_v32  ;;  %v2070_v46 = vsel %vm1904_vm2, %v2037_v34, 0.0  ;;  %v1910_v43 = vsel %vm1904_vm2, %v2853_v32, 0.0 }
 0x29d   : > { %v1906_v36 = vsel %vm1904_vm2, %v1748_v33, 0.0  ;;  %v2036_v37 = vmul.f32 %v1748_v33, %v1748_v33  ;;  %2208 = vst.msk [vmem:[%s3680_s9 + $0x8] sm:$0xff] %vm1904_vm2, %v1748_v33  ;;  %v2067_v38 = vsel %vm1904_vm2, %v2035_v29, 0.0 }
 0x29e   : > { %v1907_v44 = vadd.f32 %v1906_v36, %v1905_v35  ;;  %v2072_v55 = vsel %vm1904_vm2, %v2038_v53, 0.0 }
 0x29f   : > { %v2068_v39 = vsel %vm1904_vm2, %v2036_v37, 0.0 }
 0x2a0   : > { %v1909_v41 = vadd.f32 %v1908_v52, %v1907_v44  ;;  %v2069_v40 = vadd.f32 %v2068_v39, %v2067_v38 }
 0x2a1   : > { %v2856_v42 = vpop.f32.mrb[4].mxu1 }
 0x2a2   : > { %v1911_v45 = vadd.f32 %v1910_v43, %v1909_v41  ;;  %v2071_v48 = vadd.f32 %v2070_v46, %v2069_v40  ;;  %2213 = vst.msk [vmem:[%s3680_s9 + $0x30] sm:$0xff] %vm1904_vm2, %v2856_v42  ;;  %v1761_v47 = vpop.f32.mrb[5].mxu1  ;;  %v2041_v54 = vmul.f32 %v2856_v42, %v2856_v42  ;;  %v1921_v62 = vsel %vm1904_vm2, %v2856_v42, 0.0 }
 0x2a3   : > { %v2039_v58 = vmul.f32 %v1761_v47, %v1761_v47  ;;  %2211 = vst.msk [vmem:[%s3680_s9 + $0x20] sm:$0xff] %vm1904_vm2, %v1761_v47  ;;  %v2857_v59 = vpop.f32.mrb[6].mxu1  ;;  %v1918_v56 = vsel %vm1904_vm2, %v1761_v47, 0.0 }
 0x2a4   : > { %v1912_v49 = vrot.slane %v1911_v45, 4  ;;  %v2073_v51 = vadd.f32 %v2072_v55, %v2071_v48  ;;  %2214 = vst.msk [vmem:[%s3680_s9 + $0x38] sm:$0xff] %vm1904_vm2, %v2857_v59  ;;  %v1764_v50 = vpop.f32.mrb[7].mxu1  ;;  %v2042_v3 = vmul.f32 %v2857_v59, %v2857_v59  ;;  %v2083_v9 = vsel %vm1904_vm2, %v2041_v54, 0.0 }
 0x2a5   : > { %v1919_v57 = vsel %vm1904_vm2, %v1764_v50, 0.0  ;;  %v2040_v61 = vmul.f32 %v1764_v50, %v1764_v50  ;;  %2212 = vst.msk [vmem:[%s3680_s9 + $0x28] sm:$0xff] %vm1904_vm2, %v1764_v50  ;;  %v2080_v63 = vsel %vm1904_vm2, %v2039_v58, 0.0  ;;  %v1923_v12 = vsel %vm1904_vm2, %v2857_v59, 0.0 }
 0x2a6   : > { %v1913_v0 = vadd.f32 %v1912_v49, %v1911_v45  ;;  %v2074_v1 = vrot.slane %v2073_v51, 4  ;;  %v1920_v60 = vadd.f32 %v1919_v57, %v1918_v56  ;;  %v2085_v18 = vsel %vm1904_vm2, %v2042_v3, 0.0 }
 0x2a7   : > { %v2081_v6 = vsel %vm1904_vm2, %v2040_v61, 0.0 }
 0x2a8   : > { %v1914_v7 = vrot.slane %v1913_v0, 2  ;;  %v2075_v2 = vadd.f32 %v2074_v1, %v2073_v51  ;;  %v1922_v4 = vadd.f32 %v1921_v62, %v1920_v60  ;;  %v2082_v5 = vadd.f32 %v2081_v6, %v2080_v63 }
 0x2a9   : > { %v2860_v13 = vpop.f32.mrb[8].mxu1 }
 0x2aa   : > { %v2076_v8 = vrot.slane %v2075_v2, 2  ;;  %v1924_v10 = vadd.f32 %v1923_v12, %v1922_v4  ;;  %v2084_v11 = vadd.f32 %v2083_v9, %v2082_v5  ;;  %2217 = vst.msk [vmem:[%s3680_s9 + $0x50] sm:$0xff] %vm1904_vm2, %v2860_v13  ;;  %v1777_v15 = vpop.f32.mrb[9].mxu1  ;;  %v1915_v14 = vadd.f32 %v1914_v7, %v1913_v0 }
 0x2ab   : > { %2215 = vst.msk [vmem:[%s3680_s9 + $0x40] sm:$0xff] %vm1904_vm2, %v1777_v15  ;;  %v2861_v19 = vpop.f32.mrb[10].mxu1  ;;  %v2043_v25 = vmul.f32 %v1777_v15, %v1777_v15  ;;  %v1934_v23 = vsel %vm1904_vm2, %v2860_v13, 0.0  ;;  %v2045_v27 = vmul.f32 %v2860_v13, %v2860_v13  ;;  %v1931_v30 = vsel %vm1904_vm2, %v1777_v15, 0.0 }
 0x2ac   : > { %v1925_v16 = vrot.slane %v1924_v10, 4  ;;  %v2086_v17 = vadd.f32 %v2085_v18, %v2084_v11  ;;  %2218 = vst.msk [vmem:[%s3680_s9 + $0x58] sm:$0xff] %vm1904_vm2, %v2861_v19  ;;  %v1780_v21 = vpop.f32.mrb[11].mxu1  ;;  %v2077_v24 = vadd.f32 %v2076_v8, %v2075_v2  ;;  %v1916_v28 = vrot.slane %v1915_v14, 1 }
 0x2ad   : > { %2216 = vst.msk [vmem:[%s3680_s9 + $0x48] sm:$0xff] %vm1904_vm2, %v1780_v21  ;;  %v1932_v31 = vsel %vm1904_vm2, %v1780_v21, 0.0  ;;  %v2044_v26 = vmul.f32 %v1780_v21, %v1780_v21  ;;  %v2093_v35 = vsel %vm1904_vm2, %v2043_v25, 0.0  ;;  %v2046_v36 = vmul.f32 %v2861_v19, %v2861_v19 }
 0x2ae   : > { %v1926_v20 = vadd.f32 %v1925_v16, %v1924_v10  ;;  %v2087_v22 = vrot.slane %v2086_v17, 4  ;;  %v1933_v33 = vadd.f32 %v1932_v31, %v1931_v30  ;;  %v2078_v34 = vrot.slane %v2077_v24, 1 }
 0x2af   : > { %v2094_v37 = vsel %vm1904_vm2, %v2044_v26, 0.0  ;;  %v2096_v40 = vsel %vm1904_vm2, %v2045_v27, 0.0  ;;  %v1936_v46 = vsel %vm1904_vm2, %v2861_v19, 0.0  ;;  %v1917_v59 = vadd.f32 %v1916_v28, %v1915_v14 }
 0x2b0   : > { %v1927_v29 = vrot.slane %v1926_v20, 2  ;;  %v2088_v32 = vadd.f32 %v2087_v22, %v2086_v17  ;;  %v1935_v53 = vadd.f32 %v1934_v23, %v1933_v33  ;;  %v2095_v39 = vadd.f32 %v2094_v37, %v2093_v35 }
 0x2b1   : > { %v2864_v44 = vpop.f32.mrb[12].mxu1  ;;  %v2079_v49 = vadd.f32 %v2078_v34, %v2077_v24  ;;  %v2098_v51 = vsel %vm1904_vm2, %v2046_v36, 0.0 }
 0x2b2   : > { %v1928_v52 = vadd.f32 %v1927_v29, %v1926_v20  ;;  %v2089_v38 = vrot.slane %v2088_v32, 2  ;;  %2221 = vst.msk [vmem:[%s3680_s9 + $0x70] sm:$0xff] %vm1904_vm2, %v2864_v44  ;;  %v1793_v41 = vpop.f32.mrb[13].mxu1  ;;  %v2049_v43 = vmul.f32 %v2864_v44, %v2864_v44  ;;  %v1937_v47 = vadd.f32 %v1936_v46, %v1935_v53 }
 0x2b3   : > { %2219 = vst.msk [vmem:[%s3680_s9 + $0x60] sm:$0xff] %vm1904_vm2, %v1793_v41  ;;  %v2865_v42 = vpop.f32.mrb[14].mxu1  ;;  %v2097_v55 = vadd.f32 %v2096_v40, %v2095_v39  ;;  %v2047_v50 = vmul.f32 %v1793_v41, %v1793_v41  ;;  %v1947_v61 = vsel %vm1904_vm2, %v2864_v44, 0.0  ;;  %v1944_v1 = vsel %vm1904_vm2, %v1793_v41, 0.0 }
 0x2b4   : > { %v1929_v45 = vrot.slane %v1928_v52, 1  ;;  %v2090_v48 = vadd.f32 %v2089_v38, %v2088_v32  ;;  %2222 = vst.msk [vmem:[%s3680_s9 + $0x78] sm:$0xff] %vm1904_vm2, %v2865_v42  ;;  %v1796_v58 = vpop.f32.mrb[15].mxu1  ;;  %v1938_v56 = vrot.slane %v1937_v47, 4  ;;  %v2109_v6 = vsel %vm1904_vm2, %v2049_v43, 0.0 }
 0x2b5   : > { %2220 = vst.msk [vmem:[%s3680_s9 + $0x68] sm:$0xff] %vm1904_vm2, %v1796_v58  ;;  %v2099_v57 = vadd.f32 %v2098_v51, %v2097_v55  ;;  %v1945_v60 = vsel %vm1904_vm2, %v1796_v58, 0.0  ;;  %v2048_v62 = vmul.f32 %v1796_v58, %v1796_v58  ;;  %v2106_v2 = vsel %vm1904_vm2, %v2047_v50, 0.0 }
 0x2b6   : > { %v1930_v54 = vadd.f32 %v1929_v45, %v1928_v52  ;;  %v2091_v0 = vrot.slane %v2090_v48, 1  ;;  %v1939_v63 = vadd.f32 %v1938_v56, %v1937_v47  ;;  %v1946_v7 = vadd.f32 %v1945_v60, %v1944_v1 }
 0x2b7   : > { %v2100_v3 = vrot.slane %v2099_v57, 4  ;;  %v2050_v4 = vmul.f32 %v2865_v42, %v2865_v42  ;;  %v2107_v5 = vsel %vm1904_vm2, %v2048_v62, 0.0  ;;  %v1949_v19 = vsel %vm1904_vm2, %v2865_v42, 0.0 }
 0x2b8   : > { %v3745_v12 = vsel %vm2017_vm3, %v1930_v54, %v1917_v59  ;;  %v1940_v13 = vrot.slane %v1939_v63, 2  ;;  %v1948_v10 = vadd.f32 %v1947_v61, %v1946_v7  ;;  %v2108_v11 = vadd.f32 %v2107_v5, %v2106_v2 }
 0x2b9   : > { %v2868_v9 = vpop.f32.mrb[16].mxu1  ;;  %v2101_v8 = vadd.f32 %v2100_v3, %v2099_v57  ;;  %v2092_v18 = vadd.f32 %v2091_v0, %v2090_v48  ;;  %v2111_v23 = vsel %vm1904_vm2, %v2050_v4, 0.0 }
 0x2ba   : > { %2225 = vst.msk [vmem:[%s3680_s9 + $0x90] sm:$0xff] %vm1904_vm2, %v2868_v9  ;;  %v1809_v15 = vpop.f32.mrb[17].mxu1  ;;  %v2053_v14 = vmul.f32 %v2868_v9, %v2868_v9  ;;  %v1941_v21 = vadd.f32 %v1940_v13, %v1939_v63  ;;  %v1950_v25 = vadd.f32 %v1949_v19, %v1948_v10  ;;  %v2110_v20 = vadd.f32 %v2109_v6, %v2108_v11 }
 0x2bb   : > { %v2051_v16 = vmul.f32 %v1809_v15, %v1809_v15  ;;  %2223 = vst.msk [vmem:[%s3680_s9 + $0x80] sm:$0xff] %vm1904_vm2, %v1809_v15  ;;  %v2869_v17 = vpop.f32.mrb[18].mxu1  ;;  %v2102_v24 = vrot.slane %v2101_v8, 2  ;;  %v1960_v27 = vsel %vm1904_vm2, %v2868_v9, 0.0  ;;  %v1957_v30 = vsel %vm1904_vm2, %v1809_v15, 0.0 }
 0x2bc   : > { %2226 = vst.msk [vmem:[%s3680_s9 + $0x98] sm:$0xff] %vm1904_vm2, %v2869_v17  ;;  %v1812_v22 = vpop.f32.mrb[19].mxu1  ;;  %v2054_v31 = vmul.f32 %v2869_v17, %v2869_v17  ;;  %v1942_v26 = vrot.slane %v1941_v21, 1  ;;  %v1951_v29 = vrot.slane %v1950_v25, 4  ;;  %v2112_v32 = vadd.f32 %v2111_v23, %v2110_v20 }
 0x2bd   : > { %2224 = vst.msk [vmem:[%s3680_s9 + $0x88] sm:$0xff] %vm1904_vm2, %v1812_v22  ;;  %v2103_v28 = vadd.f32 %v2102_v24, %v2101_v8  ;;  %v2122_v33 = vsel %vm1904_vm2, %v2053_v14, 0.0  ;;  %v1958_v34 = vsel %vm1904_vm2, %v1812_v22, 0.0  ;;  %v2052_v35 = vmul.f32 %v1812_v22, %v1812_v22 }
 0x2be   : > { %v2179_v36 = vsel %vm2017_vm3, %v2092_v18, %v2079_v49  ;;  %v1952_v44 = vadd.f32 %v1951_v29, %v1950_v25  ;;  %v2113_v52 = vrot.slane %v2112_v32, 4  ;;  %v2119_v38 = vsel %vm1904_vm2, %v2051_v16, 0.0 }
 0x2bf   : > { %v2104_v37 = vrot.slane %v2103_v28, 1  ;;  %v1962_v53 = vsel %vm1904_vm2, %v2869_v17, 0.0  ;;  %v2124_v39 = vsel %vm1904_vm2, %v2054_v31, 0.0  ;;  %v1959_v41 = vadd.f32 %v1958_v34, %v1957_v30 }
 0x2c0   : > { %v2120_v40 = vsel %vm1904_vm2, %v2052_v35, 0.0  ;;  %v1943_v43 = vadd.f32 %v1942_v26, %v1941_v21  ;;  %v1953_v42 = vrot.slane %v1952_v44, 2  ;;  %v2114_v45 = vadd.f32 %v2113_v52, %v2112_v32 }
 0x2c1   : > { %v2872_v46 = vpop.f32.mrb[20].mxu1  ;;  %v2121_v48 = vadd.f32 %v2120_v40, %v2119_v38  ;;  %v2105_v55 = vadd.f32 %v2104_v37, %v2103_v28  ;;  %v1961_v58 = vadd.f32 %v1960_v27, %v1959_v41 }
 0x2c2   : > { %2229 = vst.msk [vmem:[%s3680_s9 + $0xb0] sm:$0xff] %vm1904_vm2, %v2872_v46  ;;  %v1825_v47 = vpop.f32.mrb[21].mxu1  ;;  %v1973_v59 = vsel %vm1904_vm2, %v2872_v46, 0.0  ;;  %v2057_v49 = vmul.f32 %v2872_v46, %v2872_v46  ;;  %v1954_v50 = vadd.f32 %v1953_v42, %v1952_v44  ;;  %v2115_v54 = vrot.slane %v2114_v45, 2 }
 0x2c3   : > { %2227 = vst.msk [vmem:[%s3680_s9 + $0xa0] sm:$0xff] %vm1904_vm2, %v1825_v47  ;;  %v2873_v51 = vpop.f32.mrb[22].mxu1  ;;  %v2123_v56 = vadd.f32 %v2122_v33, %v2121_v48  ;;  %v2055_v57 = vmul.f32 %v1825_v47, %v1825_v47  ;;  %v1963_v0 = vadd.f32 %v1962_v53, %v1961_v58  ;;  %v1970_v60 = vsel %vm1904_vm2, %v1825_v47, 0.0 }
 0x2c4   : > { %2230 = vst.msk [vmem:[%s3680_s9 + $0xb8] sm:$0xff] %vm1904_vm2, %v2873_v51  ;;  %v1828_v61 = vpop.f32.mrb[23].mxu1  ;;  %v2135_v1 = vsel %vm1904_vm2, %v2057_v49, 0.0  ;;  %v2058_v62 = vmul.f32 %v2873_v51, %v2873_v51  ;;  %v1955_v63 = vrot.slane %v1954_v50, 1  ;;  %v2116_v3 = vadd.f32 %v2115_v54, %v2114_v45 }
 0x2c5   : > { %2228 = vst.msk [vmem:[%s3680_s9 + $0xa8] sm:$0xff] %vm1904_vm2, %v1828_v61  ;;  %v2125_v6 = vadd.f32 %v2124_v39, %v2123_v56  ;;  %v1975_v7 = vsel %vm1904_vm2, %v2873_v51, 0.0  ;;  %v1964_v2 = vrot.slane %v1963_v0, 4  ;;  %v2132_v4 = vsel %vm1904_vm2, %v2055_v57, 0.0 }
 0x2c6   : > { %v1971_v5 = vsel %vm1904_vm2, %v1828_v61, 0.0  ;;  %v2056_v9 = vmul.f32 %v1828_v61, %v1828_v61  ;;  %v2117_v13 = vrot.slane %v2116_v3, 1  ;;  %v2137_v10 = vsel %vm1904_vm2, %v2058_v62, 0.0 }
 0x2c7   : > { %v2126_v8 = vrot.slane %v2125_v6, 4  ;;  %v1972_v11 = vadd.f32 %v1971_v5, %v1970_v60  ;;  %v1965_v15 = vadd.f32 %v1964_v2, %v1963_v0  ;;  %v2020_v14 = vsel %vm2019_vm4, %v1943_v43, %v3745_v12 }
 0x2c8   : > { %v2133_v18 = vsel %vm1904_vm2, %v2056_v9, 0.0  ;;  %v3785_v16 = vsel %vm2019_vm4, %v2105_v55, %v2179_v36  ;;  %v1956_v20 = vadd.f32 %v1955_v63, %v1954_v50 }
 0x2c9   : > { %v2876_v19 = vpop.f32.mrb[24].mxu1  ;;  %v2127_v17 = vadd.f32 %v2126_v8, %v2125_v6  ;;  %v1974_v21 = vadd.f32 %v1973_v59, %v1972_v11  ;;  %v2134_v24 = vadd.f32 %v2133_v18, %v2132_v4  ;;  %v1966_v22 = vrot.slane %v1965_v15, 2 }
 0x2ca   : > { %2233 = vst.msk [vmem:[%s3680_s9 + $0xd0] sm:$0xff] %vm1904_vm2, %v2876_v19  ;;  %v1841_v25 = vpop.f32.mrb[25].mxu1  ;;  %v1986_v23 = vsel %vm1904_vm2, %v2876_v19, 0.0  ;;  %v2061_v27 = vmul.f32 %v2876_v19, %v2876_v19  ;;  %v2022_v45 = vsel %vm2021_vm5, %v1956_v20, %v2020_v14  ;;  %v2118_v59 = vadd.f32 %v2117_v13, %v2116_v3 }
 0x2cb   : > { %v2059_v30 = vmul.f32 %v1841_v25, %v1841_v25  ;;  %2231 = vst.msk [vmem:[%s3680_s9 + $0xc0] sm:$0xff] %vm1904_vm2, %v1841_v25  ;;  %v2877_v12 = vpop.f32.mrb[26].mxu1  ;;  %v2128_v31 = vrot.slane %v2127_v17, 2  ;;  %v1976_v26 = vadd.f32 %v1975_v7, %v1974_v21  ;;  %v2136_v28 = vadd.f32 %v2135_v1, %v2134_v24 }
 0x2cc   : > { %v1983_v29 = vsel %vm1904_vm2, %v1841_v25, 0.0  ;;  %2234 = vst.msk [vmem:[%s3680_s9 + $0xd8] sm:$0xff] %vm1904_vm2, %v2877_v12  ;;  %v1844_v32 = vpop.f32.mrb[27].mxu1  ;;  %v1967_v33 = vadd.f32 %v1966_v22, %v1965_v15  ;;  %v2148_v34 = vsel %vm1904_vm2, %v2061_v27, 0.0  ;;  %v1988_v35 = vsel %vm1904_vm2, %v2877_v12, 0.0 }
 0x2cd   : > { %v2062_v36 = vmul.f32 %v2877_v12, %v2877_v12  ;;  %2232 = vst.msk [vmem:[%s3680_s9 + $0xc8] sm:$0xff] %vm1904_vm2, %v1844_v32  ;;  %v2129_v37 = vadd.f32 %v2128_v31, %v2127_v17  ;;  %v1977_v44 = vrot.slane %v1976_v26, 4  ;;  %v2138_v52 = vadd.f32 %v2137_v10, %v2136_v28 }
 0x2ce   : > { %v1984_v38 = vsel %vm1904_vm2, %v1844_v32, 0.0  ;;  %v2145_v53 = vsel %vm1904_vm2, %v2059_v30, 0.0  ;;  %v2060_v41 = vmul.f32 %v1844_v32, %v1844_v32  ;;  %v1968_v40 = vrot.slane %v1967_v33, 1 }
 0x2cf   : > { %v1985_v39 = vadd.f32 %v1984_v38, %v1983_v29  ;;  %v1978_v46 = vadd.f32 %v1977_v44, %v1976_v26  ;;  %v2139_v43 = vrot.slane %v2138_v52, 4  ;;  %v2150_v42 = vsel %vm1904_vm2, %v2062_v36, 0.0 }
 0x2d0   : > { %v2146_v47 = vsel %vm1904_vm2, %v2060_v41, 0.0  ;;  %v1969_v58 = vadd.f32 %v1968_v40, %v1967_v33  ;;  %v2130_v56 = vrot.slane %v2129_v37, 1  ;;  %v2181_v27 = vsel %vm2021_vm5, %v2118_v59, %v3785_v16 }
 0x2d1   : > { %v1987_v48 = vadd.f32 %v1986_v23, %v1985_v39  ;;  %v2880_v55 = vpop.f32.mrb[28].mxu1  ;;  %v1979_v49 = vrot.slane %v1978_v46, 2  ;;  %v2140_v51 = vadd.f32 %v2139_v43, %v2138_v52  ;;  %v2147_v50 = vadd.f32 %v2146_v47, %v2145_v53 }
 0x2d2   : > { %2237 = vst.msk [vmem:[%s3680_s9 + $0xf0] sm:$0xff] %vm1904_vm2, %v2880_v55  ;;  %v1857_v54 = vpop.f32.mrb[29].mxu1  ;;  %v1999_v61 = vsel %vm1904_vm2, %v2880_v55, 0.0  ;;  %v2065_v0 = vmul.f32 %v2880_v55, %v2880_v55  ;;  %v2024_v19 = vsel %vm2023_vm6, %v1969_v58, %v2022_v45  ;;  %v2131_v14 = vadd.f32 %v2130_v56, %v2129_v37 }
 0x2d3   : > { %v1989_v57 = vadd.f32 %v1988_v35, %v1987_v48  ;;  %v2063_v1 = vmul.f32 %v1857_v54, %v1857_v54  ;;  %2235 = vst.msk [vmem:[%s3680_s9 + $0xe0] sm:$0xff] %vm1904_vm2, %v1857_v54  ;;  %v2881_v60 = vpop.f32.mrb[30].mxu1  ;;  %v2149_v62 = vadd.f32 %v2148_v34, %v2147_v50  ;;  %v1996_v63 = vsel %vm1904_vm2, %v1857_v54, 0.0 }
 0x2d4   : > { %v2001_v3 = vsel %vm1904_vm2, %v2881_v60, 0.0  ;;  %2238 = vst.msk [vmem:[%s3680_s9 + $0xf8] sm:$0xff] %vm1904_vm2, %v2881_v60  ;;  %v1860_v6 = vpop.f32.mrb[31].mxu1  ;;  %v1980_v7 = vadd.f32 %v1979_v49, %v1978_v46  ;;  %v2161_v4 = vsel %vm1904_vm2, %v2065_v0, 0.0  ;;  %v2066_v5 = vmul.f32 %v2881_v60, %v2881_v60 }
 0x2d5   : > { %v1990_v2 = vrot.slane %v1989_v57, 4  ;;  %v1997_v9 = vsel %vm1904_vm2, %v1860_v6, 0.0  ;;  %2236 = vst.msk [vmem:[%s3680_s9 + $0xe8] sm:$0xff] %vm1904_vm2, %v1860_v6  ;;  %v2151_v13 = vadd.f32 %v2150_v42, %v2149_v62  ;;  %v2158_v8 = vsel %vm1904_vm2, %v2063_v1, 0.0 }
 0x2d6   : > { %v1998_v10 = vadd.f32 %v1997_v9, %v1996_v63  ;;  %v2064_v11 = vmul.f32 %v1860_v6, %v1860_v6  ;;  %v1981_v18 = vrot.slane %v1980_v7, 1  ;;  %v2141_v25 = vrot.slane %v2140_v51, 2 }
 0x2d7   : > { %v1991_v15 = vadd.f32 %v1990_v2, %v1989_v57  ;;  %v2152_v17 = vrot.slane %v2151_v13, 4  ;;  %v2182_v26 = vsel %vm2023_vm6, %v2131_v14, %v2181_v27  ;;  %v2163_v33 = vsel %vm1904_vm2, %v2066_v5, 0.0 }
 0x2d8   : > { %v2000_v21 = vadd.f32 %v1999_v61, %v1998_v10  ;;  %v2159_v24 = vsel %vm1904_vm2, %v2064_v11, 0.0  ;;  %v1982_v22 = vadd.f32 %v1981_v18, %v1980_v7  ;;  %v2142_v12 = vadd.f32 %v2141_v25, %v2140_v51 }
 0x2d9   : > { %v2160_v20 = vadd.f32 %v2159_v24, %v2158_v8  ;;  %v1992_v23 = vrot.slane %v1991_v15, 2  ;;  %v2153_v31 = vadd.f32 %v2152_v17, %v2151_v13 }
 0x2da   : > { %v2002_v30 = vadd.f32 %v2001_v3, %v2000_v21  ;;  %v2026_v32 = vsel %vm2025_vm7, %v1982_v22, %v2024_v19  ;;  %v2143_v35 = vrot.slane %v2142_v12, 1 }
 0x2db   : > { %v2162_v28 = vadd.f32 %v2161_v4, %v2160_v20  ;;  %v1993_v29 = vadd.f32 %v1992_v23, %v1991_v15  ;;  %v2154_v36 = vrot.slane %v2153_v31, 2 }
 0x2dc   : > { %v2003_v34 = vrot.slane %v2002_v30, 4  ;;  %v2144_v38 = vadd.f32 %v2143_v35, %v2142_v12 }
 0x2dd   : > { %v2164_v37 = vadd.f32 %v2163_v33, %v2162_v28  ;;  %v1994_v44 = vrot.slane %v1993_v29, 1  ;;  %v2155_v16 = vadd.f32 %v2154_v36, %v2153_v31 }
 0x2de   : > { %v2004_v52 = vadd.f32 %v2003_v34, %v2002_v30  ;;  %v2183_v46 = vsel %vm2025_vm7, %v2144_v38, %v2182_v26 }
 0x2df   : > { %v2165_v53 = vrot.slane %v2164_v37, 4  ;;  %v1995_v39 = vadd.f32 %v1994_v44, %v1993_v29  ;;  %v2156_v40 = vrot.slane %v2155_v16, 1 }
 0x2e0   : > { %v2005_v41 = vrot.slane %v2004_v52, 2 }
 0x2e1   : > { %v2028_v43 = vsel %vm2027_vm8, %v1995_v39, %v2026_v32  ;;  %v2166_v42 = vadd.f32 %v2165_v53, %v2164_v37  ;;  %v2157_v48 = vadd.f32 %v2156_v40, %v2155_v16 }
 0x2e2   : > { %v2006_v45 = vadd.f32 %v2005_v41, %v2004_v52 }
 0x2e3   : > { %v2167_v47 = vrot.slane %v2166_v42, 2  ;;  %v2184_v58 = vsel %vm2027_vm8, %v2157_v48, %v2183_v46 }
 0x2e4   : > { %v2007_v55 = vrot.slane %v2006_v45, 1 }
 0x2e5   : > { %v2168_v59 = vadd.f32 %v2167_v47, %v2166_v42 }
 0x2e6   : > { %v2008_v49 = vadd.f32 %v2007_v55, %v2006_v45 }
 0x2e7   : > { %v2169_v51 = vrot.slane %v2168_v59, 1 }
 0x2e8   : > { %v2030_v50 = vsel %vm2029_vm9, %v2008_v49, %v2028_v43 }
 0x2e9   : > { %v2032_v54 = vsel %vm1904_vm2, %v2030_v50, 0.0  ;;  %v2170_v56 = vadd.f32 %v2169_v51, %v2168_v59 }
 0x2ea   : > { %2033 = vadd.xlane.f32.xlu0 %v2032_v54 }
 0x2eb   : > { %v2185_v57 = vsel %vm2029_vm9, %v2170_v56, %v2184_v58 }
 0x2ec   : > { %v2187_v61 = vsel %vm1904_vm2, %v2185_v57, 0.0 }
 0x2ee   : > { %2188 = vadd.xlane.f32.xlu0 %v2187_v61 }
 0x2ef   : > { %3065 = shalt.err (!%p3062_p3)
}
 0x2f0   : > { %s3066_s30 = scalar_lea.hbm %s3832_s13, 4096  ;;  %s3070_s9 = scalar_lea.hbm %s3954_s3, 8192 }
 0x2f1   : > { %p3067_p4 = scmp.ne.s32.totalorder %s3832_s13, %s3066_s30  ;;  %p3071_p9 = scmp.lt.u32.totalorder %s3832_s13, %s3954_s3 }
 0x2f2   : > { %p3072_p10 = scmp.lt.u32.totalorder %s3070_s9, %s3066_s30  ;;  %p3074_p12 = scmp.lt.u32.totalorder %s3066_s30, %s3832_s13 }
 0x2f3   : > { %p3068_p7 = pnand %p3067_p4, %p3251_p5 }
 0x2f4   : > { %p3073_p11 = por %p3072_p10, %p3071_p9 }
 0x2f5   : > { %p3069_p8 = pneg %p3068_p7 }
 0x2f6   : > { %p3075_p13 = por %p3074_p12, %p3073_p11 }
 0x2f8   : > { %p3076_p0 = pnand %p3075_p13, %p3069_p8 }
 0x2fa   : > { %3079 = shalt.err (!%p3076_p0)
}
 0x2fb   : > { %s3177_s12 = smov 128   ;;  %s3178_s16 = smov 8   ;;  %v2191_v0 = vlaneseq  ;;  %vm2198_vm10 = vcmask 57344  }
 0x2fc   : > { %2946 = dma.vmem_to_hbm [thread:$0]  (%p3251_p5), %s3835_s14, 4096, %s3832_s13, %s2240_s15, %s3177_s12, %s3177_s12, %s3178_s16  }
 0x2fd   : > { %v2192_v1 = vand.u32 127, %v2191_v0  ;;  %v2194_v60 = vshrl.u32 %v2191_v0, 7  ;;  %s2244_s17 = sand.u32 1, %s3232_s22   ;;  %s2567_s25 = sshll.u32 %s3232_s22, 4 }
 0x2fe   : > { %s227_s26 = scalar_lea.vmem [#allocation4], %s3677_s7  ;;  %s3869_s9 = scalar_lea.hbm %s3955_s4, %s2567_s25 }
 0x2ff   : > { %v2195_v62 = vsub.s32 %v2192_v1, %v2194_v60  ;;  %s2277_s30 = sshll.u32 %s227_s26, 4  ;;  %s233_s13 = scalar_lea.vmem [#allocation6], %s3677_s7  ;;  %s3871_s30 = int_to_ptr.vmem [resolvable:$true] %s2277_s30 }
 0x300   : > { %s3876_s14 = sshll.u32 %s233_s13, 4  ;;  %s3879_s15 = scalar_lea.sflag [#allocation5], %s2244_s17  ;;  %s2291_s14 = int_to_ptr.vmem [resolvable:$true] %s3876_s14 }
 0x301   : > { %s3080_s10 = scalar_lea.vmem %s3871_s30, 16  ;;  %s3179_s11 = smov [#allocation4]  }
 0x302   : > { %p3081_p1 = scmp.ne.s32.totalorder %s3871_s30, %s3080_s10  ;;  %s3084_s12 = sshll.u32 %s3179_s11, 4  ;;  %s3085_s12 = int_to_ptr.vmem [resolvable:$false] %s3084_s12 }
 0x303   : > { %s3086_s16 = scalar_lea.vmem %s3085_s12, 32  ;;  %p3087_p4 = scmp.lt.s32.totalorder %s3871_s30, %s3085_s12 }
 0x304   : > { %p3082_p2 = pnand %p3081_p1, %p3251_p5  ;;  %p3088_p7 = scmp.lt.s32.totalorder %s3086_s16, %s3080_s10 }
 0x306   : > { %p3083_p3 = pneg %p3082_p2  ;;  %p3089_p8 = por %p3088_p7, %p3087_p4 }
 0x308   : > { %p3090_p9 = pnand %p3089_p8, %p3083_p3 }
 0x377   : > { %v2034_v63 = vpop.xlane.xlu0 %2033 }
 0x378   : > { %v2196_v3 = vrot.slane %v2034_v63, %v2195_v62 }
 0x37a   : > { %2199 = vst.msk [vmem:[%s227_s26] sm:$0x1] %vm2198_vm10, %v2196_v3 }
 0x37b   : > { %v2189_v6 = vpop.xlane.xlu0 %2188 }
 0x37c   : > { %3093 = shalt.err (!%p3090_p9)
}
 0x37d   : > { %s3094_s17 = scalar_lea.hbm %s3869_s9, 16  ;;  %s3098_s8 = scalar_lea.hbm %s3955_s4, 32 }
 0x37e   : > { %p3095_p10 = scmp.ne.s32.totalorder %s3869_s9, %s3094_s17  ;;  %p3099_p13 = scmp.lt.u32.totalorder %s3869_s9, %s3955_s4 }
 0x37f   : > { %p3100_p0 = scmp.lt.u32.totalorder %s3098_s8, %s3094_s17  ;;  %p3102_p2 = scmp.lt.u32.totalorder %s3094_s17, %s3869_s9 }
 0x380   : > { %p3096_p11 = pnand %p3095_p10, %p3251_p5 }
 0x381   : > { %p3101_p1 = por %p3100_p0, %p3099_p13 }
 0x382   : > { %p3097_p12 = pneg %p3096_p11 }
 0x383   : > { %p3103_p3 = por %p3102_p2, %p3101_p1 }
 0x385   : > { %p3104_p4 = pnand %p3103_p3, %p3097_p12 }
 0x387   : > { %3107 = shalt.err (!%p3104_p4)
}
 0x388   : > { %2947 = dma.vmem_to_hbm [thread:$0]  (%p3251_p5), %s3871_s30, 16, %s3869_s9, %s3879_s15   ;;  %v2204_v7 = vrot.slane %v2189_v6, %v2195_v62 }
 0x389   : > { %s3908_s26 = scalar_lea.hbm %s3956_s5, %s2567_s25  ;;  %s3108_s17 = scalar_lea.vmem %s2291_s14, 16 }
 0x38a   : > { %2206 = vst.msk [vmem:[%s233_s13] sm:$0x1] %vm2198_vm10, %v2204_v7  ;;  %p3109_p7 = scmp.ne.s32.totalorder %s2291_s14, %s3108_s17  ;;  %s3180_s6 = smov [#allocation6]  }
 0x38b   : > { %s3112_s8 = sshll.u32 %s3180_s6, 4  ;;  %s3113_s8 = int_to_ptr.vmem [resolvable:$false] %s3112_s8 }
 0x38c   : > { %p3110_p8 = pnand %p3109_p7, %p3251_p5  ;;  %s3114_s30 = scalar_lea.vmem %s3113_s8, 32 }
 0x38d   : > { %p3115_p10 = scmp.lt.s32.totalorder %s2291_s14, %s3113_s8  ;;  %p3116_p11 = scmp.lt.s32.totalorder %s3114_s30, %s3108_s17 }
 0x38e   : > { %p3111_p9 = pneg %p3110_p8 }
 0x38f   : > { %p3117_p12 = por %p3116_p11, %p3115_p10 }
 0x391   : > { %p3118_p13 = pnand %p3117_p12, %p3111_p9 }
 0x393   : > { %3121 = shalt.err (!%p3118_p13)
}
 0x394   : > { %s3122_s22 = scalar_lea.hbm %s3908_s26, 16  ;;  %s3126_s9 = scalar_lea.hbm %s3956_s5, 32 }
 0x395   : > { %p3123_p0 = scmp.ne.s32.totalorder %s3908_s26, %s3122_s22  ;;  %p3127_p3 = scmp.lt.u32.totalorder %s3908_s26, %s3956_s5 }
 0x396   : > { %p3128_p4 = scmp.lt.u32.totalorder %s3126_s9, %s3122_s22  ;;  %p3130_p8 = scmp.lt.u32.totalorder %s3122_s22, %s3908_s26 }
 0x397   : > { %p3124_p1 = pnand %p3123_p0, %p3251_p5 }
 0x398   : > { %p3129_p7 = por %p3128_p4, %p3127_p3 }
 0x399   : > { %p3125_p2 = pneg %p3124_p1 }
 0x39a   : > { %p3131_p9 = por %p3130_p8, %p3129_p7 }
 0x39c   : > { %p3132_p10 = pnand %p3131_p9, %p3125_p2 }
 0x39e   : > { %3135 = shalt.err (!%p3132_p10)
}
 0x39f   : > { %2948 = dma.vmem_to_hbm [thread:$0]  (%p3251_p5), %s2291_s14, 16, %s3908_s26, %s3879_s15  }
 0x3a0 PF: > { %p2962_p11 = scmp.ge.s32.totalorder %s3174_s21, 2  ;;  %s2302_s12 = sand.u32 1, %s3162_s18  }
 0x3a1   : > { %s2303_s10 = scalar_lea.sflag [#allocation3], %s2302_s12 }
 0x3a2   : > { %p2953_p12 = pnand %p2962_p11, %p3255_p6 }
 0x3a4   : > { %3153 = dma.done.wait (!%p2953_p12), %s2303_s10, 4096  }
 0x3a5   : > { %3155 = vsyncadd (!%p2953_p12), %s2303_s10, 4294963200  ;;  %s2311_s16 = sand.u32 1, %s2402_s23  }
 0x3a6   : > { %s2312_s17 = scalar_lea.sflag [#allocation5], %s2311_s16 }
 0x3a7   : > { %3157 = dma.done.wait (!%p2953_p12), %s2312_s17, 32  }
 0x3a8   : > { %3159 = vsyncadd (!%p2953_p12), %s2312_s17, 4294967264  ;;  %p19_p5 = scmp.ge.s32.totalorder %s3236_s24, 4   ;;  %s3959_s18 = smov %s3166_s19 }
 0x3a9   : > { %s3960_s19 = smov %s3170_s20  ;;  %s3961_s20 = smov %s3249_s27 }
 0x3aa   : > { %s3962_s21 = smov %s3236_s24  ;;  %21 = sbr.rel (!%p19_p5) target bundleno = 5 (0x5), region = 101 }
 0x3b1   :  { %2324 = vsyncpa [#allocation3], 1 }
 0x3b2   :  { %2326 = vsyncpa [#allocation3 + $0x1], 1 }
 0x3b3   :  { %2327 = vsyncpa [#allocation5], 1 }
 0x3b4   :  { %2329 = vsyncpa [#allocation5 + $0x1], 1 }

</bundles_post_ra>
